<compile_context>
chip_gen: v7x
topology: tpu7x:2x2x1
jax: 0.10.0
libtpu: 0.0.40
codegen_flags: <defaults>
</compile_context>

<pallas_src>
import functools

import jax
import jax.numpy as jnp
from jax.experimental import pallas as pl
from jax.experimental.pallas import tpu as pltpu

# Layer sizes of MLPArc3_ps.
DIMS = [38, 152, 76, 38, 76, 152, 1]
NUM_LAYERS = len(DIMS) - 1          # 6 linear layers
NUM_HIDDEN = NUM_LAYERS - 1         # 5 hidden layers (ReLU after each)


def _round_up(v, m):
    return ((v + m - 1) // m) * m


# Padded feature dims: input stays 38 (matches x's last dim), hidden dims are
# padded to multiples of 128 for full-lane tiles, final output stays 1.
PADDED = [DIMS[0]] + [_round_up(d, 128) for d in DIMS[1:-1]] + [DIMS[-1]]


def mlp_kernel(x_ref, *refs):
    """refs = (w0, b0, ..., w4, b4, w_last_row, b_last, o_ref)."""
    o_ref = refs[-1]
    b_last = refs[-2]        # (1, 1)  f32
    w_last = refs[-3]        # (1, PADDED[-2]) bf16

    h = x_ref[...].astype(jnp.float32)
    for layer in range(NUM_HIDDEN):
        w_ref = refs[2 * layer]          # (pin, pout) bf16, resident in VMEM
        b_ref = refs[2 * layer + 1]      # (1, pout)   f32
        h = jnp.dot(h.astype(jnp.bfloat16), w_ref[...],
                    preferred_element_type=jnp.float32)
        h = jnp.maximum(h + b_ref[...], 0.0)     # bias + ReLU in f32 on VPU

    # Final 152(->256 padded) -> 1 layer: broadcast multiply + lane reduce on
    # VPU/XLU slots instead of a 1-lane MXU matmul.
    w_row = w_last[...].astype(jnp.float32)                      # (1, 256)
    out = jnp.sum(h * w_row, axis=-1, keepdims=True) + b_last[...]
    o_ref[...] = out.astype(o_ref.dtype)


@functools.partial(jax.jit, static_argnames=("block_n",))
def mlp_arc3_ps(x, params, block_n=256):
    """x: (N, 38) f32; params: list of NUM_LAYERS (w, b), w:(in,out), b:(1,out)."""
    n = x.shape[0]
    n_pad = _round_up(n, block_n)
    if n_pad != n:
        x = jnp.pad(x, ((0, n_pad - n), (0, 0)))

    flat = []
    in_specs = [pl.BlockSpec((block_n, DIMS[0]), lambda i: (i, 0))]

    # Hidden layers: zero-padded (in, out) weights in bf16, biases in f32.
    for layer in range(NUM_HIDDEN):
        w, b = params[layer]
        pin, pout = PADDED[layer], PADDED[layer + 1]
        wp = jnp.zeros((pin, pout), jnp.float32).at[: w.shape[0], : w.shape[1]].set(w)
        bp = jnp.zeros((1, pout), jnp.float32).at[:, : b.shape[1]].set(b)
        flat += [wp.astype(jnp.bfloat16), bp]
        in_specs += [
            pl.BlockSpec((pin, pout), lambda i: (0, 0)),   # full weight, VMEM-resident
            pl.BlockSpec((1, pout), lambda i: (0, 0)),
        ]

    # Final 152 -> 1 layer stored as a (1, padded_in) row for the reduction.
    w_out, b_out = params[-1]                              # (152, 1), (1, 1)
    p_in = PADDED[-2]
    w_row = jnp.zeros((1, p_in), jnp.float32).at[0, : w_out.shape[0]].set(w_out[:, 0])
    flat += [w_row.astype(jnp.bfloat16), b_out.astype(jnp.float32)]
    in_specs += [
        pl.BlockSpec((1, p_in), lambda i: (0, 0)),
        pl.BlockSpec((1, 1), lambda i: (0, 0)),
    ]

    # Advisory cost hint for XLA's scheduler.
    flops = 2 * n_pad * sum(DIMS[i] * DIMS[i + 1] for i in range(NUM_LAYERS))
    weight_bytes = sum(
        PADDED[i] * PADDED[i + 1] * 2 + PADDED[i + 1] * 4 for i in range(NUM_HIDDEN)
    ) + p_in * 2 + 4
    bytes_accessed = n_pad * DIMS[0] * 4 + n_pad * DIMS[-1] * 4 + weight_bytes

    out = pl.pallas_call(
        mlp_kernel,
        out_shape=jax.ShapeDtypeStruct((n_pad, DIMS[-1]), jnp.float32),
        grid_spec=pltpu.PrefetchScalarGridSpec(
            num_scalar_prefetch=0,
            grid=(n_pad // block_n,),
            in_specs=in_specs,
            out_specs=pl.BlockSpec((block_n, DIMS[-1]), lambda i: (i, 0)),
        ),
        compiler_params=pltpu.CompilerParams(
            dimension_semantics=("parallel",),
        ),
        cost_estimate=pl.CostEstimate(
            flops=int(flops), transcendentals=0, bytes_accessed=int(bytes_accessed)
        ),
    )(x, *flat)
    return out[:n]


def init_params(key):
    """Deterministic init matching PyTorch Linear default U[-1/sqrt(fan_in), +]."""
    params = []
    for layer in range(NUM_LAYERS):
        fan_in, fan_out = DIMS[layer], DIMS[layer + 1]
        key, kw, kb = jax.random.split(key, 3)
        bound = 1.0 / (fan_in ** 0.5)
        w = jax.random.uniform(kw, (fan_in, fan_out), jnp.float32, -bound, bound)
        b = jax.random.uniform(kb, (1, fan_out), jnp.float32, -bound, bound)
        params.append((w, b))
    return params


def mlp_ref(x, params):
    """Reference with the same bf16-input / f32-accumulate numerics as the kernel."""
    h = x.astype(jnp.float32)
    for layer in range(NUM_HIDDEN):
        w, b = params[layer]
        h = jnp.dot(h.astype(jnp.bfloat16), w.astype(jnp.bfloat16),
                    preferred_element_type=jnp.float32)
        h = jnp.maximum(h + b, 0.0)
    w, b = params[-1]
    wr = w[:, 0].astype(jnp.bfloat16).astype(jnp.float32)
    return jnp.sum(h * wr[None, :], axis=-1, keepdims=True) + b[0, 0]


if __name__ == "__main__":
    key = jax.random.PRNGKey(0)
    kx, kp = jax.random.split(key)

    N = 64  # small batch; wrapper pads internally to a multiple of block_n
    x = jax.random.normal(kx, (N, DIMS[0]), jnp.float32)
    params = init_params(kp)

    out = mlp_arc3_ps(x, params, block_n=256)
    out = jax.block_until_ready(out)

    ref = mlp_ref(x, params)
    assert out.shape == (N, 1), out.shape
    assert jnp.allclose(out, ref, rtol=2e-3, atol=2e-3), "mismatch vs reference"

    print("KERNEL_OK")
</pallas_src>

<mosaic_0001>
module attributes {stable_mosaic.version = 11 : i64} {
  func.func @mlp_kernel(%arg0: i32, %arg1: memref<256x38xf32, #tpu.memory_space<vmem>>, %arg2: memref<38x256xbf16, #tpu.memory_space<vmem>>, %arg3: memref<1x256xf32, #tpu.memory_space<vmem>>, %arg4: memref<256x128xbf16, #tpu.memory_space<vmem>>, %arg5: memref<1x128xf32, #tpu.memory_space<vmem>>, %arg6: memref<128x128xbf16, #tpu.memory_space<vmem>>, %arg7: memref<1x128xf32, #tpu.memory_space<vmem>>, %arg8: memref<128x128xbf16, #tpu.memory_space<vmem>>, %arg9: memref<1x128xf32, #tpu.memory_space<vmem>>, %arg10: memref<128x256xbf16, #tpu.memory_space<vmem>>, %arg11: memref<1x256xf32, #tpu.memory_space<vmem>>, %arg12: memref<1x256xbf16, #tpu.memory_space<vmem>>, %arg13: memref<1x1xf32, #tpu.memory_space<vmem>>, %arg14: memref<256x1xf32, #tpu.memory_space<vmem>>) attributes {dimension_semantics = [#tpu.dimension_semantics<parallel>], iteration_bounds = array<i64: 1>, scalar_prefetch = 0 : i64, scratch_operands = 0 : i64, tpu.core_type = #tpu.core_type<tc>, window_params = [{transform_indices = @transform_0, window_bounds = array<i64: 256, 38>}, {pipeline_mode = #tpu.pipeline_mode<synchronous>, transform_indices = @transform_1, window_bounds = array<i64: 38, 256>}, {pipeline_mode = #tpu.pipeline_mode<synchronous>, transform_indices = @transform_2, window_bounds = array<i64: 1, 256>}, {pipeline_mode = #tpu.pipeline_mode<synchronous>, transform_indices = @transform_3, window_bounds = array<i64: 256, 128>}, {pipeline_mode = #tpu.pipeline_mode<synchronous>, transform_indices = @transform_4, window_bounds = array<i64: 1, 128>}, {pipeline_mode = #tpu.pipeline_mode<synchronous>, transform_indices = @transform_5, window_bounds = array<i64: 128, 128>}, {pipeline_mode = #tpu.pipeline_mode<synchronous>, transform_indices = @transform_6, window_bounds = array<i64: 1, 128>}, {pipeline_mode = #tpu.pipeline_mode<synchronous>, transform_indices = @transform_7, window_bounds = array<i64: 128, 128>}, {pipeline_mode = #tpu.pipeline_mode<synchronous>, transform_indices = @transform_8, window_bounds = array<i64: 1, 128>}, {pipeline_mode = #tpu.pipeline_mode<synchronous>, transform_indices = @transform_9, window_bounds = array<i64: 128, 256>}, {pipeline_mode = #tpu.pipeline_mode<synchronous>, transform_indices = @transform_10, window_bounds = array<i64: 1, 256>}, {pipeline_mode = #tpu.pipeline_mode<synchronous>, transform_indices = @transform_11, window_bounds = array<i64: 1, 256>}, {pipeline_mode = #tpu.pipeline_mode<synchronous>, transform_indices = @transform_12, window_bounds = array<i64: 1, 1>}, {transform_indices = @transform_13, window_bounds = array<i64: 256, 1>}]} {
    %c0 = arith.constant 0 : index
    %c0_0 = arith.constant 0 : index
    %0 = vector.load %arg1[%c0, %c0_0] : memref<256x38xf32, #tpu.memory_space<vmem>>, vector<256x38xf32>
    %1 = arith.truncf %0 : vector<256x38xf32> to vector<256x38xbf16>
    %c0_1 = arith.constant 0 : index
    %c0_2 = arith.constant 0 : index
    %2 = vector.load %arg2[%c0_1, %c0_2] : memref<38x256xbf16, #tpu.memory_space<vmem>>, vector<38x256xbf16>
    %cst = arith.constant dense<0.000000e+00> : vector<256x256xf32>
    %3 = tpu.matmul %1, %2, %cst {dimension_numbers = #tpu.dot_dimension_numbers<[1], [0], [0], [1], [0, 0, 1, 1], [], []>} : vector<256x38xbf16>, vector<38x256xbf16>, vector<256x256xf32> -> vector<256x256xf32>
    %c0_3 = arith.constant 0 : index
    %c0_4 = arith.constant 0 : index
    %4 = vector.load %arg3[%c0_3, %c0_4] : memref<1x256xf32, #tpu.memory_space<vmem>>, vector<1x256xf32>
    %5 = vector.broadcast %4 : vector<1x256xf32> to vector<256x256xf32>
    %6 = arith.addf %3, %5 : vector<256x256xf32>
    %cst_5 = arith.constant 0.000000e+00 : f32
    %7 = vector.broadcast %cst_5 : f32 to vector<256x256xf32>
    %8 = arith.maximumf %6, %7 : vector<256x256xf32>
    %9 = arith.truncf %8 : vector<256x256xf32> to vector<256x256xbf16>
    %c0_6 = arith.constant 0 : index
    %c0_7 = arith.constant 0 : index
    %10 = vector.load %arg4[%c0_6, %c0_7] : memref<256x128xbf16, #tpu.memory_space<vmem>>, vector<256x128xbf16>
    %cst_8 = arith.constant dense<0.000000e+00> : vector<256x128xf32>
    %11 = tpu.matmul %9, %10, %cst_8 {dimension_numbers = #tpu.dot_dimension_numbers<[1], [0], [0], [1], [0, 0, 1, 1], [], []>} : vector<256x256xbf16>, vector<256x128xbf16>, vector<256x128xf32> -> vector<256x128xf32>
    %c0_9 = arith.constant 0 : index
    %c0_10 = arith.constant 0 : index
    %12 = vector.load %arg5[%c0_9, %c0_10] : memref<1x128xf32, #tpu.memory_space<vmem>>, vector<1x128xf32>
    %13 = vector.broadcast %12 : vector<1x128xf32> to vector<256x128xf32>
    %14 = arith.addf %11, %13 : vector<256x128xf32>
    %cst_11 = arith.constant 0.000000e+00 : f32
    %15 = vector.broadcast %cst_11 : f32 to vector<256x128xf32>
    %16 = arith.maximumf %14, %15 : vector<256x128xf32>
    %17 = arith.truncf %16 : vector<256x128xf32> to vector<256x128xbf16>
    %c0_12 = arith.constant 0 : index
    %c0_13 = arith.constant 0 : index
    %18 = vector.load %arg6[%c0_12, %c0_13] : memref<128x128xbf16, #tpu.memory_space<vmem>>, vector<128x128xbf16>
    %cst_14 = arith.constant dense<0.000000e+00> : vector<256x128xf32>
    %19 = tpu.matmul %17, %18, %cst_14 {dimension_numbers = #tpu.dot_dimension_numbers<[1], [0], [0], [1], [0, 0, 1, 1], [], []>} : vector<256x128xbf16>, vector<128x128xbf16>, vector<256x128xf32> -> vector<256x128xf32>
    %c0_15 = arith.constant 0 : index
    %c0_16 = arith.constant 0 : index
    %20 = vector.load %arg7[%c0_15, %c0_16] : memref<1x128xf32, #tpu.memory_space<vmem>>, vector<1x128xf32>
    %21 = vector.broadcast %20 : vector<1x128xf32> to vector<256x128xf32>
    %22 = arith.addf %19, %21 : vector<256x128xf32>
    %cst_17 = arith.constant 0.000000e+00 : f32
    %23 = vector.broadcast %cst_17 : f32 to vector<256x128xf32>
    %24 = arith.maximumf %22, %23 : vector<256x128xf32>
    %25 = arith.truncf %24 : vector<256x128xf32> to vector<256x128xbf16>
    %c0_18 = arith.constant 0 : index
    %c0_19 = arith.constant 0 : index
    %26 = vector.load %arg8[%c0_18, %c0_19] : memref<128x128xbf16, #tpu.memory_space<vmem>>, vector<128x128xbf16>
    %cst_20 = arith.constant dense<0.000000e+00> : vector<256x128xf32>
    %27 = tpu.matmul %25, %26, %cst_20 {dimension_numbers = #tpu.dot_dimension_numbers<[1], [0], [0], [1], [0, 0, 1, 1], [], []>} : vector<256x128xbf16>, vector<128x128xbf16>, vector<256x128xf32> -> vector<256x128xf32>
    %c0_21 = arith.constant 0 : index
    %c0_22 = arith.constant 0 : index
    %28 = vector.load %arg9[%c0_21, %c0_22] : memref<1x128xf32, #tpu.memory_space<vmem>>, vector<1x128xf32>
    %29 = vector.broadcast %28 : vector<1x128xf32> to vector<256x128xf32>
    %30 = arith.addf %27, %29 : vector<256x128xf32>
    %cst_23 = arith.constant 0.000000e+00 : f32
    %31 = vector.broadcast %cst_23 : f32 to vector<256x128xf32>
    %32 = arith.maximumf %30, %31 : vector<256x128xf32>
    %33 = arith.truncf %32 : vector<256x128xf32> to vector<256x128xbf16>
    %c0_24 = arith.constant 0 : index
    %c0_25 = arith.constant 0 : index
    %34 = vector.load %arg10[%c0_24, %c0_25] : memref<128x256xbf16, #tpu.memory_space<vmem>>, vector<128x256xbf16>
    %cst_26 = arith.constant dense<0.000000e+00> : vector<256x256xf32>
    %35 = tpu.matmul %33, %34, %cst_26 {dimension_numbers = #tpu.dot_dimension_numbers<[1], [0], [0], [1], [0, 0, 1, 1], [], []>} : vector<256x128xbf16>, vector<128x256xbf16>, vector<256x256xf32> -> vector<256x256xf32>
    %c0_27 = arith.constant 0 : index
    %c0_28 = arith.constant 0 : index
    %36 = vector.load %arg11[%c0_27, %c0_28] : memref<1x256xf32, #tpu.memory_space<vmem>>, vector<1x256xf32>
    %37 = vector.broadcast %36 : vector<1x256xf32> to vector<256x256xf32>
    %38 = arith.addf %35, %37 : vector<256x256xf32>
    %cst_29 = arith.constant 0.000000e+00 : f32
    %39 = vector.broadcast %cst_29 : f32 to vector<256x256xf32>
    %40 = arith.maximumf %38, %39 : vector<256x256xf32>
    %c0_30 = arith.constant 0 : index
    %c0_31 = arith.constant 0 : index
    %41 = vector.load %arg12[%c0_30, %c0_31] : memref<1x256xbf16, #tpu.memory_space<vmem>>, vector<1x256xbf16>
    %42 = arith.extf %41 : vector<1x256xbf16> to vector<1x256xf32>
    %43 = vector.broadcast %42 : vector<1x256xf32> to vector<256x256xf32>
    %44 = arith.mulf %40, %43 : vector<256x256xf32>
    %cst_32 = arith.constant dense<0.000000e+00> : vector<256xf32>
    %45 = vector.multi_reduction <add>, %44, %cst_32 [1] : vector<256x256xf32> to vector<256xf32>
    %46 = vector.shape_cast %45 : vector<256xf32> to vector<256x1xf32>
    %c0_33 = arith.constant 0 : index
    %c0_34 = arith.constant 0 : index
    %47 = vector.load %arg13[%c0_33, %c0_34] : memref<1x1xf32, #tpu.memory_space<vmem>>, vector<1x1xf32>
    %48 = vector.broadcast %47 : vector<1x1xf32> to vector<256x1xf32>
    %49 = arith.addf %46, %48 : vector<256x1xf32>
    %c0_35 = arith.constant 0 : index
    %c0_36 = arith.constant 0 : index
    %50 = vector.load %arg14[%c0_35, %c0_36] : memref<256x1xf32, #tpu.memory_space<vmem>>, vector<256x1xf32>
    tpu.vector_store %arg14[%c0_35, %c0_36], %49 {strides = array<i32>} : memref<256x1xf32, #tpu.memory_space<vmem>>, vector<256x1xf32>,
    return
  }
  func.func @transform_0(%arg0: i32) -> (i32, i32) {
    %c0_i32 = arith.constant 0 : i32
    %c0_i32_0 = arith.constant 0 : i32
    return %arg0, %c0_i32 : i32, i32
  }
  func.func @transform_1(%arg0: i32) -> (i32, i32) {
    %c0_i32 = arith.constant 0 : i32
    %c0_i32_0 = arith.constant 0 : i32
    %c0_i32_1 = arith.constant 0 : i32
    return %c0_i32, %c0_i32_0 : i32, i32
  }
  func.func @transform_2(%arg0: i32) -> (i32, i32) {
    %c0_i32 = arith.constant 0 : i32
    %c0_i32_0 = arith.constant 0 : i32
    %c0_i32_1 = arith.constant 0 : i32
    return %c0_i32, %c0_i32_0 : i32, i32
  }
  func.func @transform_3(%arg0: i32) -> (i32, i32) {
    %c0_i32 = arith.constant 0 : i32
    %c0_i32_0 = arith.constant 0 : i32
    %c0_i32_1 = arith.constant 0 : i32
    return %c0_i32, %c0_i32_0 : i32, i32
  }
  func.func @transform_4(%arg0: i32) -> (i32, i32) {
    %c0_i32 = arith.constant 0 : i32
    %c0_i32_0 = arith.constant 0 : i32
    %c0_i32_1 = arith.constant 0 : i32
    return %c0_i32, %c0_i32_0 : i32, i32
  }
  func.func @transform_5(%arg0: i32) -> (i32, i32) {
    %c0_i32 = arith.constant 0 : i32
    %c0_i32_0 = arith.constant 0 : i32
    %c0_i32_1 = arith.constant 0 : i32
    return %c0_i32, %c0_i32_0 : i32, i32
  }
  func.func @transform_6(%arg0: i32) -> (i32, i32) {
    %c0_i32 = arith.constant 0 : i32
    %c0_i32_0 = arith.constant 0 : i32
    %c0_i32_1 = arith.constant 0 : i32
    return %c0_i32, %c0_i32_0 : i32, i32
  }
  func.func @transform_7(%arg0: i32) -> (i32, i32) {
    %c0_i32 = arith.constant 0 : i32
    %c0_i32_0 = arith.constant 0 : i32
    %c0_i32_1 = arith.constant 0 : i32
    return %c0_i32, %c0_i32_0 : i32, i32
  }
  func.func @transform_8(%arg0: i32) -> (i32, i32) {
    %c0_i32 = arith.constant 0 : i32
    %c0_i32_0 = arith.constant 0 : i32
    %c0_i32_1 = arith.constant 0 : i32
    return %c0_i32, %c0_i32_0 : i32, i32
  }
  func.func @transform_9(%arg0: i32) -> (i32, i32) {
    %c0_i32 = arith.constant 0 : i32
    %c0_i32_0 = arith.constant 0 : i32
    %c0_i32_1 = arith.constant 0 : i32
    return %c0_i32, %c0_i32_0 : i32, i32
  }
  func.func @transform_10(%arg0: i32) -> (i32, i32) {
    %c0_i32 = arith.constant 0 : i32
    %c0_i32_0 = arith.constant 0 : i32
    %c0_i32_1 = arith.constant 0 : i32
    return %c0_i32, %c0_i32_0 : i32, i32
  }
  func.func @transform_11(%arg0: i32) -> (i32, i32) {
    %c0_i32 = arith.constant 0 : i32
    %c0_i32_0 = arith.constant 0 : i32
    %c0_i32_1 = arith.constant 0 : i32
    return %c0_i32, %c0_i32_0 : i32, i32
  }
  func.func @transform_12(%arg0: i32) -> (i32, i32) {
    %c0_i32 = arith.constant 0 : i32
    %c0_i32_0 = arith.constant 0 : i32
    %c0_i32_1 = arith.constant 0 : i32
    return %c0_i32, %c0_i32_0 : i32, i32
  }
  func.func @transform_13(%arg0: i32) -> (i32, i32) {
    %c0_i32 = arith.constant 0 : i32
    %c0_i32_0 = arith.constant 0 : i32
    return %arg0, %c0_i32 : i32, i32
  }
}

</mosaic_0001>

<bundles_post_ra>
// kernel: mlp_arc3_ps.1
= control target key start
LH: loop header
LB: loop body
LE: loop exit
PB: predicated region body
PF: predicated region fallthrough
CT: control target
= control target key end

     0   :  { %v2410_v1 = vmov 0   ;;  %vm186_vm0 = vcmask 1042432   ;;  %vm137_vm1 = vcmask 310272   ;;  %vm1971_vm2 = vcmask 7168   ;;  %s3325_s1 = inlined_call_operand.vmem [shape: bf16[38,256], index: 1, kind: input, shape index: {}]   ;;  %s3326_s0 = inlined_call_operand.vmem [shape: f32[256,38], index: 0, kind: input, shape index: {}]   ;;  %s3327_s3 = inlined_call_operand.vmem [shape: bf16[256,128], index: 3, kind: input, shape index: {}]   ;;  %s3328_s2 = inlined_call_operand.vmem [shape: f32[1,256], index: 2, kind: input, shape index: {}]   ;;  %s3329_s5 = inlined_call_operand.vmem [shape: bf16[128,128], index: 5, kind: input, shape index: {}]   ;;  %s3330_s7 = inlined_call_operand.vmem [shape: bf16[128,128], index: 7, kind: input, shape index: {}]   ;;  %s3331_s4 = inlined_call_operand.vmem [shape: f32[1,128], index: 4, kind: input, shape index: {}]   ;;  %s3332_s6 = inlined_call_operand.vmem [shape: f32[1,128], index: 6, kind: input, shape index: {}]   ;;  %s3333_s9 = inlined_call_operand.vmem [shape: bf16[128,256], index: 9, kind: input, shape index: {}]   ;;  %s3334_s8 = inlined_call_operand.vmem [shape: f32[1,128], index: 8, kind: input, shape index: {}]   ;;  %s3335_s11 = inlined_call_operand.vmem [shape: bf16[1,256], index: 11, kind: input, shape index: {}]   ;;  %s3336_s10 = inlined_call_operand.vmem [shape: f32[1,256], index: 10, kind: input, shape index: {}]   ;;  %s3337_s12 = inlined_call_operand.<no memory space> [shape: f32[1,1], index: 12, kind: input, shape index: {}]   ;;  %s3338_s13 = inlined_call_operand.vmem [shape: f32[256,1], index: 13, kind: output, shape index: {}]  }
   0x1   :  { %v2346_v0 = vld [vmem:[%s3325_s1 + $0x4] ss:$8 sps:$4 sm:$0xff]   ;;  %225 = vmatprep.mubr.bf16.mxu0 %v2410_v1  ;;  %305 = vmatprep.mubr.bf16.mxu1 %v2410_v1  ;;  %v2348_v2 = vld [vmem:[%s3325_s1] ss:$8 sps:$4 sm:$0xff]   ;;  %v2349_v3 = vld [vmem:[%s3325_s1 + $0x14] ss:$8 sps:$4 sm:$0xff]  }
   0x2   :  { %193 = vmatprep.subr.bf16.mxu0 %v2346_v0  ;;  %v99_v4 = vld [vmem:[%s3325_s1 + $0x20] sm:$0x77]  ;;  %2339 = vmatprep.subr.bf16.mxu1 %v2346_v0  ;;  %v2351_v5 = vld [vmem:[%s3325_s1 + $0x10] ss:$8 sps:$4 sm:$0xff]   ;;  %v48_v9 = vld [vmem:[%s3326_s0 + $0x8] sm:$0xff] }
   0x3   :  { %194 = vmatpush1.bf16.msra.mxu0 %v2348_v2  ;;  %2342 = vmatpush1.bf16.msra.mxu1 %v2348_v2  ;;  %v2013_v6 = vcombine.high %v99_v4, %v99_v4  ;;  %v2012_v7 = vcombine.low %v99_v4, %v99_v4  ;;  %v47_v8 = vld [vmem:[%s3326_s0] sm:$0xff]  ;;  %v64_v12 = vld [vmem:[%s3326_s0 + $0x88] sm:$0xff]  ;;  %v49_v15 = vld [vmem:[%s3326_s0 + $0x10] sm:$0xff] }
   0x4   :  { %195 = vmatprep.subr.bf16.mxu0 %v2349_v3  ;;  %2340 = vmatprep.subr.bf16.mxu1 %v2349_v3  ;;  %v63_v11 = vld [vmem:[%s3326_s0 + $0x80] sm:$0xff]  ;;  %v79_v13 = vpack.c.bf16 %v48_v9, %v47_v8  ;;  %v50_v16 = vld [vmem:[%s3326_s0 + $0x18] sm:$0xff]  ;;  %v65_v17 = vld [vmem:[%s3326_s0 + $0x90] sm:$0xff] }
   0x5   :  { %v188_v10 = vsel %vm186_vm0, %v2012_v7, 0  ;;  %v87_v14 = vpack.c.bf16 %v64_v12, %v63_v11  ;;  %v66_v18 = vld [vmem:[%s3326_s0 + $0x98] sm:$0xff]  ;;  %v2354_v19 = vld [vmem:[%s3327_s3 + $0x40] sm:$0xff]   ;;  %v2356_v21 = vld [vmem:[%s3327_s3 + $0x48] sm:$0xff]   ;;  %v80_v23 = vpack.c.bf16 %v50_v16, %v49_v15 }
   0x6   :  { %v2355_v20 = vld [vmem:[%s3327_s3] sm:$0xff]   ;;  %v2357_v22 = vld [vmem:[%s3327_s3 + $0x8] sm:$0xff]   ;;  %v88_v24 = vpack.c.bf16 %v66_v18, %v65_v17  ;;  %v2358_v25 = vld [vmem:[%s3327_s3 + $0x50] sm:$0xff]  }
   0x7   :  { %196 = vmatpush1.bf16.msra.mxu0 %v2351_v5  ;;  %2343 = vmatpush1.bf16.msra.mxu1 %v2351_v5  ;;  %v51_v26 = vld [vmem:[%s3326_s0 + $0x20] sm:$0xff]  ;;  %v52_v27 = vld [vmem:[%s3326_s0 + $0x28] sm:$0xff]  ;;  %v2359_v29 = vld [vmem:[%s3327_s3 + $0x10] sm:$0xff]  }
   0x8   :  { %2014 = vmatprep.subr.msk.bf16.mxu0 %vm186_vm0, %v2013_v6  ;;  %2341 = vmatprep.subr.msk.bf16.mxu1 %vm186_vm0, %v2013_v6  ;;  %v67_v28 = vld [vmem:[%s3326_s0 + $0xa0] sm:$0xff]  ;;  %v2360_v30 = vld [vmem:[%s3327_s3 + $0x58] sm:$0xff]   ;;  %v68_v31 = vld [vmem:[%s3326_s0 + $0xa8] sm:$0xff]  ;;  %v81_v33 = vpack.c.bf16 %v52_v27, %v51_v26 }
   0x9   :  { %v2361_v32 = vld [vmem:[%s3327_s3 + $0x18] sm:$0xff]   ;;  %v89_v34 = vpack.c.bf16 %v68_v31, %v67_v28  ;;  %v2362_v35 = vld [vmem:[%s3327_s3 + $0x60] sm:$0xff]   ;;  %v53_v37 = vld [vmem:[%s3326_s0 + $0x30] sm:$0xff] }
   0xa   :  { %v2363_v36 = vld [vmem:[%s3327_s3 + $0x20] sm:$0xff]   ;;  %v2364_v38 = vld [vmem:[%s3327_s3 + $0x68] sm:$0xff]   ;;  %v54_v39 = vld [vmem:[%s3326_s0 + $0x38] sm:$0xff] }
   0xb   :  { %198 = vmatpush1.bf16.msra.mxu0 %v188_v10  ;;  %2344 = vmatpush1.bf16.msra.mxu1 %v188_v10  ;;  %v69_v40 = vld [vmem:[%s3326_s0 + $0xb0] sm:$0xff]  ;;  %v70_v41 = vld [vmem:[%s3326_s0 + $0xb8] sm:$0xff]  ;;  %v2365_v42 = vld [vmem:[%s3327_s3 + $0x28] sm:$0xff]   ;;  %v82_v43 = vpack.c.bf16 %v54_v39, %v53_v37  ;;  %v102_v10 = vlaneseq }
   0xc   :  { %2083 = vmatprep.subr.bf16.mxu1 %v2354_v19  ;;  %v90_v44 = vpack.c.bf16 %v70_v41, %v69_v40  ;;  %v2366_v45 = vld [vmem:[%s3327_s3 + $0x70] sm:$0xff]   ;;  %v55_v47 = vld [vmem:[%s3326_s0 + $0x40] sm:$0xff]  ;;  %v56_v48 = vld [vmem:[%s3326_s0 + $0x48] sm:$0xff] }
   0xd   :  { %v2367_v46 = vld [vmem:[%s3327_s3 + $0x30] sm:$0xff]   ;;  %v71_v49 = vld [vmem:[%s3326_s0 + $0xc0] sm:$0xff]  ;;  %v72_v50 = vld [vmem:[%s3326_s0 + $0xc8] sm:$0xff]  ;;  %v83_v51 = vpack.c.bf16 %v56_v48, %v55_v47  ;;  %v2672_v11 = vshrl.u32 %v102_v10, 7 }
   0xe   :  { %2015 = vmatmul.mubr.msk.bf16.vlgmr.msra.gmra.mrb[0].mxu0 %vm137_vm1, %v79_v13  ;;  %2023 = vmatmul.mubr.msk.bf16.vlgmr.msra.gmra.mrb[0].mxu1 %vm137_vm1, %v87_v14  ;;  %v91_v52 = vpack.c.bf16 %v72_v50, %v71_v49  ;;  %v57_v53 = vld [vmem:[%s3326_s0 + $0x50] sm:$0xff]  ;;  %v58_v54 = vld [vmem:[%s3326_s0 + $0x58] sm:$0xff]  ;;  %v59_v59 = vld [vmem:[%s3326_s0 + $0x60] sm:$0xff] }
   0xf   :  { %235 = vmatprep.mubr.bf16.mxu0 %v2410_v1  ;;  %315 = vmatprep.mubr.bf16.mxu1 %v2410_v1  ;;  %v73_v55 = vld [vmem:[%s3326_s0 + $0xd0] sm:$0xff]  ;;  %v74_v56 = vld [vmem:[%s3326_s0 + $0xd8] sm:$0xff]  ;;  %v84_v57 = vpack.c.bf16 %v58_v54, %v57_v53  ;;  %v60_v60 = vld [vmem:[%s3326_s0 + $0x68] sm:$0xff]  ;;  %v2675_v12 = vsub.s32 0, %v2672_v11  ;;  %v108_v14 = vsub.s32 1, %v2672_v11 }
  0x10   :  { %2084 = vmatpush3.bf16.msra.mxu1 %v2355_v20  ;;  %v92_v58 = vpack.c.bf16 %v74_v56, %v73_v55  ;;  %v75_v61 = vld [vmem:[%s3326_s0 + $0xe0] sm:$0xff]  ;;  %v76_v62 = vld [vmem:[%s3326_s0 + $0xe8] sm:$0xff]  ;;  %v85_v63 = vpack.c.bf16 %v60_v60, %v59_v59  ;;  %v61_v2 = vld [vmem:[%s3326_s0 + $0x70] sm:$0xff] }
  0x11   :  { %2085 = vmatprep.subr.bf16.mxu1 %v2356_v21  ;;  %v93_v0 = vpack.c.bf16 %v76_v62, %v75_v61  ;;  %v62_v3 = vld [vmem:[%s3326_s0 + $0x78] sm:$0xff]  ;;  %v77_v4 = vld [vmem:[%s3326_s0 + $0xf0] sm:$0xff]  ;;  %v100_v13 = vld [vmem:[%s3328_s2] sm:$0x3] }
  0x12   :  { %v78_v5 = vld [vmem:[%s3326_s0 + $0xf8] sm:$0xff]  ;;  %v86_v6 = vpack.c.bf16 %v62_v3, %v61_v2  ;;  %v2682_v15 = vrot.slane %v100_v13, %v2675_v12  ;;  %v2686_v16 = vrot.slane %v100_v13, %v108_v14  ;;  %v2370_v39 = vld [vmem:[%s3329_s5] sm:$0xff]   ;;  %v2371_v40 = vld [vmem:[%s3329_s5 + $0x8] sm:$0xff]  }
  0x13   :  { %v94_v7 = vpack.c.bf16 %v78_v5, %v77_v4  ;;  %v2368_v8 = vld [vmem:[%s3327_s3 + $0x78] sm:$0xff]   ;;  %2243 = vmatprep.subr.bf16.mxu0 %v2370_v39  ;;  %v2372_v49 = vld [vmem:[%s3329_s5 + $0x10] sm:$0xff]  }
  0x14   :  { %2086 = vmatpush3.bf16.msra.mxu1 %v2357_v22  ;;  %v2369_v9 = vld [vmem:[%s3327_s3 + $0x38] sm:$0xff]   ;;  %2244 = vmatpush3.bf16.msra.mxu0 %v2370_v39 }
  0x15   :  { %2087 = vmatprep.subr.bf16.mxu1 %v2358_v25  ;;  %2245 = vmatprep.subr.bf16.mxu0 %v2371_v40 }
  0x16   :  { %2016 = vmatmul.mubr.msk.bf16.gmra.mrb[4].mxu0 %vm137_vm1, %v80_v23  ;;  %2024 = vmatmul.mubr.msk.bf16.gmra.mrb[4].mxu1 %vm137_vm1, %v88_v24 }
  0x17   :  { %245 = vmatprep.mubr.bf16.mxu0 %v2410_v1  ;;  %325 = vmatprep.mubr.bf16.mxu1 %v2410_v1 }
  0x18   :  { %2088 = vmatpush3.bf16.msra.mxu1 %v2359_v29  ;;  %2246 = vmatpush3.bf16.msra.mxu0 %v2371_v40 }
  0x19   :  { %2089 = vmatprep.subr.bf16.mxu1 %v2360_v30  ;;  %2247 = vmatprep.subr.bf16.mxu0 %v2372_v49 }
  0x1c   :  { %2090 = vmatpush3.bf16.msra.mxu1 %v2361_v32  ;;  %2248 = vmatpush3.bf16.msra.mxu0 %v2372_v49 }
  0x1d   :  { %2091 = vmatprep.subr.bf16.mxu1 %v2362_v35 }
  0x1e   :  { %2017 = vmatmul.mubr.msk.bf16.gmra.mrb[8].mxu0 %vm137_vm1, %v81_v33  ;;  %2025 = vmatmul.mubr.msk.bf16.gmra.mrb[8].mxu1 %vm137_vm1, %v89_v34 }
  0x1f   :  { %255 = vmatprep.mubr.bf16.mxu0 %v2410_v1  ;;  %335 = vmatprep.mubr.bf16.mxu1 %v2410_v1 }
  0x20   :  { %2092 = vmatpush3.bf16.msra.mxu1 %v2363_v36 }
  0x21   :  { %2093 = vmatprep.subr.bf16.mxu1 %v2364_v38 }
  0x24   :  { %2094 = vmatpush3.bf16.msra.mxu1 %v2365_v42 }
  0x25   :  { %2095 = vmatprep.subr.bf16.mxu1 %v2366_v45 }
  0x26   :  { %2018 = vmatmul.mubr.msk.bf16.gmra.mrb[12].mxu0 %vm137_vm1, %v82_v43  ;;  %2026 = vmatmul.mubr.msk.bf16.gmra.mrb[12].mxu1 %vm137_vm1, %v90_v44 }
  0x27   :  { %265 = vmatprep.mubr.bf16.mxu0 %v2410_v1  ;;  %345 = vmatprep.mubr.bf16.mxu1 %v2410_v1 }
  0x28   :  { %2096 = vmatpush3.bf16.msra.mxu1 %v2367_v46 }
  0x29   :  { %2097 = vmatprep.subr.bf16.mxu1 %v2368_v8 }
  0x2c   :  { %2098 = vmatpush3.bf16.msra.mxu1 %v2369_v9 }
  0x2e   :  { %2019 = vmatmul.mubr.msk.bf16.gmra.mrb[16].mxu0 %vm137_vm1, %v83_v51  ;;  %2027 = vmatmul.mubr.msk.bf16.gmra.mrb[16].mxu1 %vm137_vm1, %v91_v52 }
  0x2f   :  { %275 = vmatprep.mubr.bf16.mxu0 %v2410_v1  ;;  %355 = vmatprep.mubr.bf16.mxu1 %v2410_v1 }
  0x36   :  { %2020 = vmatmul.mubr.msk.bf16.gmra.mrb[20].mxu0 %vm137_vm1, %v84_v57  ;;  %2028 = vmatmul.mubr.msk.bf16.gmra.mrb[20].mxu1 %vm137_vm1, %v92_v58 }
  0x37   :  { %285 = vmatprep.mubr.bf16.mxu0 %v2410_v1  ;;  %365 = vmatprep.mubr.bf16.mxu1 %v2410_v1 }
  0x3e   :  { %2021 = vmatmul.mubr.msk.bf16.gmra.mrb[24].mxu0 %vm137_vm1, %v85_v63  ;;  %2029 = vmatmul.mubr.msk.bf16.gmra.mrb[24].mxu1 %vm137_vm1, %v93_v0  ;;  %v2373_v63 = vld [vmem:[%s3329_s5 + $0x18] sm:$0xff]  }
  0x3f   :  { %295 = vmatprep.mubr.bf16.mxu0 %v2410_v1  ;;  %375 = vmatprep.mubr.bf16.mxu1 %v2410_v1 }
  0x40   :  { %2249 = vmatprep.subr.bf16.mxu0 %v2373_v63 }
  0x41   :  { %2250 = vmatpush3.bf16.msra.mxu0 %v2373_v63 }
  0x46   :  { %2022 = vmatmul.mubr.msk.bf16.gmra.mrb[28].mxu0 %vm137_vm1, %v86_v6  ;;  %2030 = vmatmul.mubr.msk.bf16.gmra.mrb[28].mxu1 %vm137_vm1, %v94_v7 }
  0xe1   :  { %v227_v17 = vpop.f32.mrb[0].mxu0  ;;  %v307_v18 = vpop.f32.mrb[0].mxu1 }
  0xe2   :  { %v228_v19 = vadd.f32 %v227_v17, %v2682_v15  ;;  %v229_v20 = vpop.f32.mrb[1].mxu0  ;;  %v308_v21 = vadd.f32 %v307_v18, %v2682_v15  ;;  %v309_v22 = vpop.f32.mrb[1].mxu1 }
  0xe3   :  { %v230_v23 = vadd.f32 %v229_v20, %v2686_v16  ;;  %v231_v24 = vpop.f32.mrb[2].mxu0  ;;  %v310_v25 = vadd.f32 %v309_v22, %v2686_v16  ;;  %v311_v26 = vpop.f32.mrb[2].mxu1 }
  0xe4   :  { %v386_v27 = vmax.f32 %v228_v19, 0.0  ;;  %v232_v28 = vadd.f32 %v231_v24, %v2682_v15  ;;  %v233_v29 = vpop.f32.mrb[3].mxu0  ;;  %v418_v30 = vmax.f32 %v308_v21, 0.0  ;;  %v312_v31 = vadd.f32 %v311_v26, %v2682_v15  ;;  %v313_v32 = vpop.f32.mrb[3].mxu1 }
  0xe5   :  { %v387_v33 = vmax.f32 %v230_v23, 0.0  ;;  %v234_v34 = vadd.f32 %v233_v29, %v2686_v16  ;;  %v419_v35 = vmax.f32 %v310_v25, 0.0  ;;  %v314_v36 = vadd.f32 %v313_v32, %v2686_v16  ;;  %v2374_v25 = vld [vmem:[%s3329_s5 + $0x20] sm:$0xff]  }
  0xe6   :  { %v388_v37 = vmax.f32 %v232_v28, 0.0  ;;  %v420_v38 = vmax.f32 %v312_v31, 0.0  ;;  %2251 = vmatprep.subr.bf16.mxu0 %v2374_v25 }
  0xe7   :  { %v389_v41 = vmax.f32 %v234_v34, 0.0  ;;  %v421_v42 = vmax.f32 %v314_v36, 0.0  ;;  %2252 = vmatpush3.bf16.msra.mxu0 %v2374_v25 }
  0xe8   :  { %v450_v43 = vpack.c.bf16 %v388_v37, %v386_v27  ;;  %v2702_v44 = vpack.c.bf16 %v420_v38, %v418_v30 }
  0xe9   :  { %v451_v45 = vpack.c.bf16 %v389_v41, %v387_v33  ;;  %v237_v46 = vpop.f32.mrb[4].mxu0  ;;  %v2704_v47 = vpack.c.bf16 %v421_v42, %v419_v35  ;;  %v317_v48 = vpop.f32.mrb[4].mxu1  ;;  %v2375_v41 = vld [vmem:[%s3329_s5 + $0x28] sm:$0xff]  }
  0xea   :  { %v238_v50 = vadd.f32 %v237_v46, %v2682_v15  ;;  %v239_v51 = vpop.f32.mrb[5].mxu0  ;;  %v318_v52 = vadd.f32 %v317_v48, %v2682_v15  ;;  %v319_v53 = vpop.f32.mrb[5].mxu1  ;;  %2253 = vmatprep.subr.bf16.mxu0 %v2375_v41 }
  0xeb   :  { %v240_v54 = vadd.f32 %v239_v51, %v2686_v16  ;;  %v241_v55 = vpop.f32.mrb[6].mxu0  ;;  %649 = vmatprep.mubr.bf16.mxu1 %v451_v45  ;;  %v320_v56 = vadd.f32 %v319_v53, %v2686_v16  ;;  %v321_v57 = vpop.f32.mrb[6].mxu1  ;;  %2254 = vmatpush3.bf16.msra.mxu0 %v2375_v41 }
  0xec   :  { %v242_v58 = vadd.f32 %v241_v55, %v2682_v15  ;;  %v243_v59 = vpop.f32.mrb[7].mxu0  ;;  %650 = vmatmul.mubr.bf16.vlgmr.msra.gmra.mrb[32].mxu1 %v450_v43  ;;  %v422_v60 = vmax.f32 %v318_v52, 0.0  ;;  %v322_v61 = vadd.f32 %v321_v57, %v2682_v15  ;;  %v323_v62 = vpop.f32.mrb[7].mxu1  ;;  %v390_v0 = vmax.f32 %v238_v50, 0.0 }
  0xed   :  { %v244_v2 = vadd.f32 %v243_v59, %v2686_v16  ;;  %v423_v3 = vmax.f32 %v320_v56, 0.0  ;;  %v324_v4 = vadd.f32 %v323_v62, %v2686_v16  ;;  %v391_v7 = vmax.f32 %v240_v54, 0.0 }
  0xee   :  { %v392_v5 = vmax.f32 %v242_v58, 0.0  ;;  %v424_v6 = vmax.f32 %v322_v61, 0.0 }
  0xef   :  { %v393_v8 = vmax.f32 %v244_v2, 0.0  ;;  %v425_v9 = vmax.f32 %v324_v4, 0.0 }
  0xf0   :  { %v452_v10 = vpack.c.bf16 %v392_v5, %v390_v0  ;;  %v2720_v13 = vpack.c.bf16 %v424_v6, %v422_v60 }
  0xf1   :  { %v453_v17 = vpack.c.bf16 %v393_v8, %v391_v7  ;;  %v247_v18 = vpop.f32.mrb[8].mxu0  ;;  %v2722_v19 = vpack.c.bf16 %v425_v9, %v423_v3  ;;  %v327_v20 = vpop.f32.mrb[8].mxu1 }
  0xf2   :  { %v248_v21 = vadd.f32 %v247_v18, %v2682_v15  ;;  %v249_v22 = vpop.f32.mrb[9].mxu0  ;;  %v328_v23 = vadd.f32 %v327_v20, %v2682_v15  ;;  %v329_v24 = vpop.f32.mrb[9].mxu1 }
  0xf3   :  { %v250_v26 = vadd.f32 %v249_v22, %v2686_v16  ;;  %v251_v27 = vpop.f32.mrb[10].mxu0  ;;  %657 = vmatprep.mubr.bf16.mxu1 %v453_v17  ;;  %v330_v28 = vadd.f32 %v329_v24, %v2686_v16  ;;  %v331_v29 = vpop.f32.mrb[10].mxu1 }
  0xf4   :  { %v252_v30 = vadd.f32 %v251_v27, %v2682_v15  ;;  %v253_v31 = vpop.f32.mrb[11].mxu0  ;;  %658 = vmatmul.mubr.bf16.gmra.mrb[36].mxu1 %v452_v10  ;;  %v426_v32 = vmax.f32 %v328_v23, 0.0  ;;  %v332_v33 = vadd.f32 %v331_v29, %v2682_v15  ;;  %v333_v34 = vpop.f32.mrb[11].mxu1  ;;  %v394_v38 = vmax.f32 %v248_v21, 0.0 }
  0xf5   :  { %v254_v35 = vadd.f32 %v253_v31, %v2686_v16  ;;  %v427_v36 = vmax.f32 %v330_v28, 0.0  ;;  %v334_v37 = vadd.f32 %v333_v34, %v2686_v16  ;;  %v395_v42 = vmax.f32 %v250_v26, 0.0 }
  0xf6   :  { %v396_v39 = vmax.f32 %v252_v30, 0.0  ;;  %v428_v40 = vmax.f32 %v332_v33, 0.0 }
  0xf7   :  { %v397_v43 = vmax.f32 %v254_v35, 0.0  ;;  %v429_v45 = vmax.f32 %v334_v37, 0.0 }
  0xf8   :  { %v454_v46 = vpack.c.bf16 %v396_v39, %v394_v38  ;;  %v2738_v48 = vpack.c.bf16 %v428_v40, %v426_v32 }
  0xf9   :  { %v455_v49 = vpack.c.bf16 %v397_v43, %v395_v42  ;;  %v257_v50 = vpop.f32.mrb[12].mxu0  ;;  %v2740_v51 = vpack.c.bf16 %v429_v45, %v427_v36  ;;  %v337_v52 = vpop.f32.mrb[12].mxu1 }
  0xfa   :  { %v258_v53 = vadd.f32 %v257_v50, %v2682_v15  ;;  %v259_v54 = vpop.f32.mrb[13].mxu0  ;;  %v338_v55 = vadd.f32 %v337_v52, %v2682_v15  ;;  %v339_v56 = vpop.f32.mrb[13].mxu1 }
  0xfb   :  { %v260_v57 = vadd.f32 %v259_v54, %v2686_v16  ;;  %v261_v58 = vpop.f32.mrb[14].mxu0  ;;  %665 = vmatprep.mubr.bf16.mxu1 %v455_v49  ;;  %v340_v59 = vadd.f32 %v339_v56, %v2686_v16  ;;  %v341_v60 = vpop.f32.mrb[14].mxu1 }
  0xfc   :  { %v262_v61 = vadd.f32 %v261_v58, %v2682_v15  ;;  %v263_v62 = vpop.f32.mrb[15].mxu0  ;;  %666 = vmatmul.mubr.bf16.gmra.mrb[40].mxu1 %v454_v46  ;;  %v430_v63 = vmax.f32 %v338_v55, 0.0  ;;  %v342_v0 = vadd.f32 %v341_v60, %v2682_v15  ;;  %v343_v2 = vpop.f32.mrb[15].mxu1  ;;  %v398_v6 = vmax.f32 %v258_v53, 0.0 }
  0xfd   :  { %v264_v3 = vadd.f32 %v263_v62, %v2686_v16  ;;  %v431_v4 = vmax.f32 %v340_v59, 0.0  ;;  %v344_v5 = vadd.f32 %v343_v2, %v2686_v16  ;;  %v399_v9 = vmax.f32 %v260_v57, 0.0 }
  0xfe   :  { %v400_v7 = vmax.f32 %v262_v61, 0.0  ;;  %v432_v8 = vmax.f32 %v342_v0, 0.0 }
  0xff   :  { %v401_v10 = vmax.f32 %v264_v3, 0.0  ;;  %v433_v17 = vmax.f32 %v344_v5, 0.0 }
 0x100   :  { %v456_v18 = vpack.c.bf16 %v400_v7, %v398_v6  ;;  %v2750_v20 = vpack.c.bf16 %v432_v8, %v430_v63 }
 0x101   :  { %v457_v21 = vpack.c.bf16 %v401_v10, %v399_v9  ;;  %v267_v22 = vpop.f32.mrb[16].mxu0  ;;  %v2752_v23 = vpack.c.bf16 %v433_v17, %v431_v4  ;;  %v347_v24 = vpop.f32.mrb[16].mxu1 }
 0x102   :  { %v268_v25 = vadd.f32 %v267_v22, %v2682_v15  ;;  %v269_v26 = vpop.f32.mrb[17].mxu0  ;;  %v348_v27 = vadd.f32 %v347_v24, %v2682_v15  ;;  %v349_v28 = vpop.f32.mrb[17].mxu1 }
 0x103   :  { %v270_v29 = vadd.f32 %v269_v26, %v2686_v16  ;;  %v271_v30 = vpop.f32.mrb[18].mxu0  ;;  %673 = vmatprep.mubr.bf16.mxu1 %v457_v21  ;;  %v350_v31 = vadd.f32 %v349_v28, %v2686_v16  ;;  %v351_v32 = vpop.f32.mrb[18].mxu1 }
 0x104   :  { %v272_v33 = vadd.f32 %v271_v30, %v2682_v15  ;;  %v273_v34 = vpop.f32.mrb[19].mxu0  ;;  %674 = vmatmul.mubr.bf16.gmra.mrb[44].mxu1 %v456_v18  ;;  %v434_v35 = vmax.f32 %v348_v27, 0.0  ;;  %v352_v36 = vadd.f32 %v351_v32, %v2682_v15  ;;  %v353_v37 = vpop.f32.mrb[19].mxu1  ;;  %v402_v41 = vmax.f32 %v268_v25, 0.0 }
 0x105   :  { %v274_v38 = vadd.f32 %v273_v34, %v2686_v16  ;;  %v435_v39 = vmax.f32 %v350_v31, 0.0  ;;  %v354_v40 = vadd.f32 %v353_v37, %v2686_v16  ;;  %v403_v45 = vmax.f32 %v270_v29, 0.0 }
 0x106   :  { %v404_v42 = vmax.f32 %v272_v33, 0.0  ;;  %v436_v43 = vmax.f32 %v352_v36, 0.0 }
 0x107   :  { %v405_v46 = vmax.f32 %v274_v38, 0.0  ;;  %v437_v49 = vmax.f32 %v354_v40, 0.0 }
 0x108   :  { %v458_v50 = vpack.c.bf16 %v404_v42, %v402_v41  ;;  %v2762_v52 = vpack.c.bf16 %v436_v43, %v434_v35 }
 0x109   :  { %v459_v53 = vpack.c.bf16 %v405_v46, %v403_v45  ;;  %v277_v54 = vpop.f32.mrb[20].mxu0  ;;  %v2764_v55 = vpack.c.bf16 %v437_v49, %v435_v39  ;;  %v357_v56 = vpop.f32.mrb[20].mxu1 }
 0x10a   :  { %v278_v57 = vadd.f32 %v277_v54, %v2682_v15  ;;  %v279_v58 = vpop.f32.mrb[21].mxu0  ;;  %v358_v59 = vadd.f32 %v357_v56, %v2682_v15  ;;  %v359_v60 = vpop.f32.mrb[21].mxu1 }
 0x10b   :  { %v280_v61 = vadd.f32 %v279_v58, %v2686_v16  ;;  %v281_v62 = vpop.f32.mrb[22].mxu0  ;;  %681 = vmatprep.mubr.bf16.mxu1 %v459_v53  ;;  %v360_v63 = vadd.f32 %v359_v60, %v2686_v16  ;;  %v361_v0 = vpop.f32.mrb[22].mxu1 }
 0x10c   :  { %v282_v2 = vadd.f32 %v281_v62, %v2682_v15  ;;  %v283_v3 = vpop.f32.mrb[23].mxu0  ;;  %682 = vmatmul.mubr.bf16.gmra.mrb[48].mxu1 %v458_v50  ;;  %v438_v4 = vmax.f32 %v358_v59, 0.0  ;;  %v362_v5 = vadd.f32 %v361_v0, %v2682_v15  ;;  %v363_v6 = vpop.f32.mrb[23].mxu1  ;;  %v406_v10 = vmax.f32 %v278_v57, 0.0 }
 0x10d   :  { %v284_v7 = vadd.f32 %v283_v3, %v2686_v16  ;;  %v439_v8 = vmax.f32 %v360_v63, 0.0  ;;  %v364_v9 = vadd.f32 %v363_v6, %v2686_v16  ;;  %v407_v21 = vmax.f32 %v280_v61, 0.0 }
 0x10e   :  { %v408_v17 = vmax.f32 %v282_v2, 0.0  ;;  %v440_v18 = vmax.f32 %v362_v5, 0.0 }
 0x10f   :  { %v409_v22 = vmax.f32 %v284_v7, 0.0  ;;  %v441_v24 = vmax.f32 %v364_v9, 0.0 }
 0x110   :  { %v460_v25 = vpack.c.bf16 %v408_v17, %v406_v10  ;;  %v2774_v26 = vpack.c.bf16 %v440_v18, %v438_v4 }
 0x111   :  { %v461_v27 = vpack.c.bf16 %v409_v22, %v407_v21  ;;  %v287_v28 = vpop.f32.mrb[24].mxu0  ;;  %v2776_v29 = vpack.c.bf16 %v441_v24, %v439_v8  ;;  %v367_v30 = vpop.f32.mrb[24].mxu1 }
 0x112   :  { %v288_v31 = vadd.f32 %v287_v28, %v2682_v15  ;;  %v289_v32 = vpop.f32.mrb[25].mxu0  ;;  %v368_v33 = vadd.f32 %v367_v30, %v2682_v15  ;;  %v369_v34 = vpop.f32.mrb[25].mxu1 }
 0x113   :  { %v290_v35 = vadd.f32 %v289_v32, %v2686_v16  ;;  %v291_v36 = vpop.f32.mrb[26].mxu0  ;;  %689 = vmatprep.mubr.bf16.mxu1 %v461_v27  ;;  %v370_v37 = vadd.f32 %v369_v34, %v2686_v16  ;;  %v371_v38 = vpop.f32.mrb[26].mxu1 }
 0x114   :  { %v292_v39 = vadd.f32 %v291_v36, %v2682_v15  ;;  %v293_v40 = vpop.f32.mrb[27].mxu0  ;;  %690 = vmatmul.mubr.bf16.gmra.mrb[52].mxu1 %v460_v25  ;;  %v442_v41 = vmax.f32 %v368_v33, 0.0  ;;  %v372_v42 = vadd.f32 %v371_v38, %v2682_v15  ;;  %v373_v43 = vpop.f32.mrb[27].mxu1  ;;  %v410_v50 = vmax.f32 %v288_v31, 0.0 }
 0x115   :  { %v294_v45 = vadd.f32 %v293_v40, %v2686_v16  ;;  %v443_v46 = vmax.f32 %v370_v37, 0.0  ;;  %v374_v49 = vadd.f32 %v373_v43, %v2686_v16  ;;  %v411_v56 = vmax.f32 %v290_v35, 0.0  ;;  %v2382_v43 = vld [vmem:[%s3330_s7 + $0x20] sm:$0xff]  }
 0x116   :  { %v412_v53 = vmax.f32 %v292_v39, 0.0  ;;  %v444_v54 = vmax.f32 %v372_v42, 0.0 }
 0x117   :  { %v413_v57 = vmax.f32 %v294_v45, 0.0  ;;  %v445_v58 = vmax.f32 %v374_v49, 0.0 }
 0x118   :  { %v462_v59 = vpack.c.bf16 %v412_v53, %v410_v50  ;;  %v478_v60 = vpack.c.bf16 %v444_v54, %v442_v41 }
 0x119   :  { %v463_v61 = vpack.c.bf16 %v413_v57, %v411_v56  ;;  %v297_v62 = vpop.f32.mrb[28].mxu0  ;;  %v479_v63 = vpack.c.bf16 %v445_v58, %v443_v46  ;;  %v377_v0 = vpop.f32.mrb[28].mxu1  ;;  %v2383_v57 = vld [vmem:[%s3330_s7 + $0x28] sm:$0xff]  }
 0x11a   :  { %v298_v2 = vadd.f32 %v297_v62, %v2682_v15  ;;  %v299_v3 = vpop.f32.mrb[29].mxu0  ;;  %v378_v4 = vadd.f32 %v377_v0, %v2682_v15  ;;  %v379_v5 = vpop.f32.mrb[29].mxu1  ;;  %v2384_v62 = vld [vmem:[%s3330_s7 + $0x30] sm:$0xff]  }
 0x11b   :  { %v300_v6 = vadd.f32 %v299_v3, %v2686_v16  ;;  %v301_v7 = vpop.f32.mrb[30].mxu0  ;;  %697 = vmatprep.mubr.bf16.mxu1 %v463_v61  ;;  %v380_v8 = vadd.f32 %v379_v5, %v2686_v16  ;;  %v381_v9 = vpop.f32.mrb[30].mxu1 }
 0x11c   :  { %v302_v10 = vadd.f32 %v301_v7, %v2682_v15  ;;  %v303_v17 = vpop.f32.mrb[31].mxu0  ;;  %698 = vmatmul.mubr.bf16.gmra.mrb[56].mxu1 %v462_v59  ;;  %v446_v18 = vmax.f32 %v378_v4, 0.0  ;;  %v382_v21 = vadd.f32 %v381_v9, %v2682_v15  ;;  %v383_v22 = vpop.f32.mrb[31].mxu1  ;;  %v414_v28 = vmax.f32 %v298_v2, 0.0  ;;  %v2376_v15 = vld [vmem:[%s3329_s5 + $0x30] sm:$0xff]   ;;  %v2385_v7 = vld [vmem:[%s3330_s7 + $0x38] sm:$0xff]  }
 0x11d   :  { %v304_v24 = vadd.f32 %v303_v17, %v2686_v16  ;;  %v447_v25 = vmax.f32 %v380_v8, 0.0  ;;  %v384_v27 = vadd.f32 %v383_v22, %v2686_v16  ;;  %v415_v32 = vmax.f32 %v300_v6, 0.0  ;;  %2255 = vmatprep.subr.bf16.mxu0 %v2376_v15  ;;  %v2377_v16 = vld [vmem:[%s3329_s5 + $0x38] sm:$0xff]  }
 0x11e   :  { %v416_v30 = vmax.f32 %v302_v10, 0.0  ;;  %v448_v31 = vmax.f32 %v382_v21, 0.0  ;;  %2256 = vmatpush3.bf16.msra.mxu0 %v2376_v15 }
 0x11f   :  { %v417_v33 = vmax.f32 %v304_v24, 0.0  ;;  %v449_v34 = vmax.f32 %v384_v27, 0.0  ;;  %2257 = vmatprep.subr.bf16.mxu0 %v2377_v16 }
 0x120   :  { %v464_v35 = vpack.c.bf16 %v416_v30, %v414_v28  ;;  %v480_v36 = vpack.c.bf16 %v448_v31, %v446_v18 }
 0x121   :  { %v465_v37 = vpack.c.bf16 %v417_v33, %v415_v32  ;;  %v481_v38 = vpack.c.bf16 %v449_v34, %v447_v25 }
 0x122   :  { %2258 = vmatpush3.bf16.msra.mxu0 %v2377_v16 }
 0x123   :  { %705 = vmatprep.mubr.bf16.mxu1 %v465_v37 }
 0x124   :  { %706 = vmatmul.mubr.bf16.gmra.mrb[60].mxu1 %v464_v35 }
 0x125   :  { %713 = vmatprep.mubr.bf16.mxu1 %v2704_v47 }
 0x12c   :  { %714 = vmatmul.mubr.bf16.gmra.mrb[64].mxu1 %v2702_v44  ;;  %v2378_v44 = vld [vmem:[%s3330_s7] sm:$0xff]  }
 0x12d   :  { %721 = vmatprep.mubr.bf16.mxu1 %v2722_v19  ;;  %2291 = vmatprep.subr.bf16.mxu1 %v2378_v44  ;;  %v2821_v19 = vld [vmem:[%s3331_s4] ss:$0 sm:$0xff] }
 0x12e   :  { %2292 = vmatpush3.bf16.msra.mxu1 %v2378_v44 }
 0x134   :  { %722 = vmatmul.mubr.bf16.gmra.mrb[68].mxu1 %v2720_v13  ;;  %v2379_v13 = vld [vmem:[%s3330_s7 + $0x8] sm:$0xff]  }
 0x135   :  { %729 = vmatprep.mubr.bf16.mxu1 %v2740_v51  ;;  %2293 = vmatprep.subr.bf16.mxu1 %v2379_v13 }
 0x136   :  { %2294 = vmatpush3.bf16.msra.mxu1 %v2379_v13 }
 0x13c   :  { %730 = vmatmul.mubr.bf16.gmra.mrb[72].mxu1 %v2738_v48 }
 0x13d   :  { %737 = vmatprep.mubr.bf16.mxu1 %v2752_v23 }
 0x144   :  { %738 = vmatmul.mubr.bf16.gmra.mrb[76].mxu1 %v2750_v20 }
 0x145   :  { %745 = vmatprep.mubr.bf16.mxu1 %v2764_v55 }
 0x14c   :  { %746 = vmatmul.mubr.bf16.gmra.mrb[80].mxu1 %v2762_v52 }
 0x14d   :  { %753 = vmatprep.mubr.bf16.mxu1 %v2776_v29  ;;  %v2381_v29 = vld [vmem:[%s3330_s7 + $0x18] sm:$0xff]  }
 0x154   :  { %754 = vmatmul.mubr.bf16.gmra.mrb[84].mxu1 %v2774_v26  ;;  %v2380_v26 = vld [vmem:[%s3330_s7 + $0x10] sm:$0xff]  }
 0x155   :  { %761 = vmatprep.mubr.bf16.mxu1 %v479_v63  ;;  %2295 = vmatprep.subr.bf16.mxu1 %v2380_v26 }
 0x156   :  { %2296 = vmatpush3.bf16.msra.mxu1 %v2380_v26 }
 0x157   :  { %2297 = vmatprep.subr.bf16.mxu1 %v2381_v29 }
 0x15a   :  { %2298 = vmatpush3.bf16.msra.mxu1 %v2381_v29 }
 0x15b   :  { %2299 = vmatprep.subr.bf16.mxu1 %v2382_v43 }
 0x15c   :  { %762 = vmatmul.mubr.bf16.gmra.mrb[88].mxu1 %v478_v60 }
 0x15d   :  { %769 = vmatprep.mubr.bf16.mxu1 %v481_v38 }
 0x15e   :  { %2300 = vmatpush3.bf16.msra.mxu1 %v2382_v43 }
 0x15f   :  { %2301 = vmatprep.subr.bf16.mxu1 %v2383_v57 }
 0x162   :  { %2302 = vmatpush3.bf16.msra.mxu1 %v2383_v57 }
 0x163   :  { %2303 = vmatprep.subr.bf16.mxu1 %v2384_v62 }
 0x164   :  { %770 = vmatmul.mubr.bf16.gmra.mrb[92].mxu1 %v480_v36 }
 0x166   :  { %2304 = vmatpush3.bf16.msra.mxu1 %v2384_v62 }
 0x167   :  { %2305 = vmatprep.subr.bf16.mxu1 %v2385_v7 }
 0x16a   :  { %2306 = vmatpush3.bf16.msra.mxu1 %v2385_v7 }
 0x1bf   :  { %v2099_v47 = vpop.f32.mrb[32].mxu1 }
 0x1c0   :  { %v2100_v48 = vpop.f32.mrb[33].mxu1 }
 0x1c1   :  { %v2101_v51 = vadd.f32 %v2100_v48, %v2099_v47  ;;  %v2102_v20 = vpop.f32.mrb[34].mxu1 }
 0x1c2   :  { %v2103_v23 = vpop.f32.mrb[35].mxu1 }
 0x1c3   :  { %v652_v52 = vadd.f32 %v2101_v51, %v2821_v19  ;;  %v2104_v55 = vadd.f32 %v2103_v23, %v2102_v20 }
 0x1c5   :  { %v655_v39 = vadd.f32 %v2104_v55, %v2821_v19  ;;  %v778_v40 = vmax.f32 %v652_v52, 0.0 }
 0x1c7   :  { %v779_v41 = vmax.f32 %v655_v39, 0.0  ;;  %v2105_v42 = vpop.f32.mrb[36].mxu1 }
 0x1c8   :  { %v2106_v45 = vpop.f32.mrb[37].mxu1 }
 0x1c9   :  { %v2107_v46 = vadd.f32 %v2106_v45, %v2105_v42  ;;  %v2108_v49 = vpop.f32.mrb[38].mxu1  ;;  %v810_v50 = vpack.c.bf16 %v779_v41, %v778_v40 }
 0x1ca   :  { %v2109_v53 = vpop.f32.mrb[39].mxu1 }
 0x1cb   :  { %v660_v54 = vadd.f32 %v2107_v46, %v2821_v19  ;;  %v2110_v56 = vadd.f32 %v2109_v53, %v2108_v49  ;;  %2259 = vmatprep.mubr.bf16.mxu0 %v810_v50 }
 0x1cd   :  { %v663_v58 = vadd.f32 %v2110_v56, %v2821_v19  ;;  %v780_v59 = vmax.f32 %v660_v54, 0.0 }
 0x1cf   :  { %v781_v60 = vmax.f32 %v663_v58, 0.0  ;;  %v2111_v61 = vpop.f32.mrb[40].mxu1 }
 0x1d0   :  { %v2112_v63 = vpop.f32.mrb[41].mxu1 }
 0x1d1   :  { %v811_v0 = vpack.c.bf16 %v781_v60, %v780_v59  ;;  %v2113_v2 = vadd.f32 %v2112_v63, %v2111_v61  ;;  %v2114_v3 = vpop.f32.mrb[42].mxu1 }
 0x1d2   :  { %v2115_v4 = vpop.f32.mrb[43].mxu1 }
 0x1d3   :  { %v668_v5 = vadd.f32 %v2113_v2, %v2821_v19  ;;  %v2116_v6 = vadd.f32 %v2115_v4, %v2114_v3  ;;  %2260 = vmatmul.mubr.bf16.vlgmr.msra.gmra.mrb[32].mxu0 %v811_v0 }
 0x1d5   :  { %v671_v8 = vadd.f32 %v2116_v6, %v2821_v19  ;;  %v782_v9 = vmax.f32 %v668_v5, 0.0 }
 0x1d7   :  { %v783_v10 = vmax.f32 %v671_v8, 0.0  ;;  %v2117_v17 = vpop.f32.mrb[44].mxu1 }
 0x1d8   :  { %v2118_v18 = vpop.f32.mrb[45].mxu1 }
 0x1d9   :  { %v2119_v21 = vadd.f32 %v2118_v18, %v2117_v17  ;;  %v2120_v22 = vpop.f32.mrb[46].mxu1  ;;  %v812_v24 = vpack.c.bf16 %v783_v10, %v782_v9 }
 0x1da   :  { %v2121_v25 = vpop.f32.mrb[47].mxu1 }
 0x1db   :  { %v676_v27 = vadd.f32 %v2119_v21, %v2821_v19  ;;  %v2122_v28 = vadd.f32 %v2121_v25, %v2120_v22  ;;  %2263 = vmatprep.mubr.bf16.mxu0 %v812_v24 }
 0x1dd   :  { %v679_v30 = vadd.f32 %v2122_v28, %v2821_v19  ;;  %v784_v31 = vmax.f32 %v676_v27, 0.0 }
 0x1df   :  { %v785_v32 = vmax.f32 %v679_v30, 0.0  ;;  %v2123_v33 = vpop.f32.mrb[48].mxu1 }
 0x1e0   :  { %v2124_v34 = vpop.f32.mrb[49].mxu1 }
 0x1e1   :  { %v2125_v35 = vadd.f32 %v2124_v34, %v2123_v33  ;;  %v2126_v36 = vpop.f32.mrb[50].mxu1  ;;  %v813_v37 = vpack.c.bf16 %v785_v32, %v784_v31 }
 0x1e2   :  { %v2127_v38 = vpop.f32.mrb[51].mxu1 }
 0x1e3   :  { %v684_v15 = vadd.f32 %v2125_v35, %v2821_v19  ;;  %v2128_v16 = vadd.f32 %v2127_v38, %v2126_v36  ;;  %2264 = vmatmul.mubr.bf16.gmra.mrb[36].mxu0 %v813_v37 }
 0x1e5   :  { %v687_v44 = vadd.f32 %v2128_v16, %v2821_v19  ;;  %v786_v47 = vmax.f32 %v684_v15, 0.0 }
 0x1e7   :  { %v787_v13 = vmax.f32 %v687_v44, 0.0  ;;  %v2129_v48 = vpop.f32.mrb[52].mxu1 }
 0x1e8   :  { %v2130_v51 = vpop.f32.mrb[53].mxu1 }
 0x1e9   :  { %v2131_v20 = vadd.f32 %v2130_v51, %v2129_v48  ;;  %v2132_v23 = vpop.f32.mrb[54].mxu1  ;;  %v814_v52 = vpack.c.bf16 %v787_v13, %v786_v47 }
 0x1ea   :  { %v2133_v55 = vpop.f32.mrb[55].mxu1 }
 0x1eb   :  { %v692_v26 = vadd.f32 %v2131_v20, %v2821_v19  ;;  %v2134_v29 = vadd.f32 %v2133_v55, %v2132_v23  ;;  %2267 = vmatprep.mubr.bf16.mxu0 %v814_v52 }
 0x1ed   :  { %v695_v39 = vadd.f32 %v2134_v29, %v2821_v19  ;;  %v788_v40 = vmax.f32 %v692_v26, 0.0 }
 0x1ef   :  { %v789_v41 = vmax.f32 %v695_v39, 0.0  ;;  %v2135_v42 = vpop.f32.mrb[56].mxu1 }
 0x1f0   :  { %v2136_v43 = vpop.f32.mrb[57].mxu1 }
 0x1f1   :  { %v2137_v45 = vadd.f32 %v2136_v43, %v2135_v42  ;;  %v2138_v46 = vpop.f32.mrb[58].mxu1  ;;  %v815_v49 = vpack.c.bf16 %v789_v41, %v788_v40 }
 0x1f2   :  { %v2139_v50 = vpop.f32.mrb[59].mxu1 }
 0x1f3   :  { %v700_v53 = vadd.f32 %v2137_v45, %v2821_v19  ;;  %v2140_v54 = vadd.f32 %v2139_v50, %v2138_v46  ;;  %2268 = vmatmul.mubr.bf16.gmra.mrb[40].mxu0 %v815_v49 }
 0x1f5   :  { %v703_v56 = vadd.f32 %v2140_v54, %v2821_v19  ;;  %v790_v57 = vmax.f32 %v700_v53, 0.0 }
 0x1f7   :  { %v791_v58 = vmax.f32 %v703_v56, 0.0  ;;  %v2141_v59 = vpop.f32.mrb[60].mxu1 }
 0x1f8   :  { %v2142_v60 = vpop.f32.mrb[61].mxu1 }
 0x1f9   :  { %v2143_v61 = vadd.f32 %v2142_v60, %v2141_v59  ;;  %v2144_v62 = vpop.f32.mrb[62].mxu1  ;;  %v816_v63 = vpack.c.bf16 %v791_v58, %v790_v57 }
 0x1fa   :  { %v2145_v0 = vpop.f32.mrb[63].mxu1 }
 0x1fb   :  { %v708_v2 = vadd.f32 %v2143_v61, %v2821_v19  ;;  %v2146_v3 = vadd.f32 %v2145_v0, %v2144_v62  ;;  %2271 = vmatprep.mubr.bf16.mxu0 %v816_v63 }
 0x1fd   :  { %v711_v4 = vadd.f32 %v2146_v3, %v2821_v19  ;;  %v792_v5 = vmax.f32 %v708_v2, 0.0 }
 0x1ff   :  { %v793_v6 = vmax.f32 %v711_v4, 0.0  ;;  %v2147_v7 = vpop.f32.mrb[64].mxu1 }
 0x200   :  { %v2148_v8 = vpop.f32.mrb[65].mxu1 }
 0x201   :  { %v2149_v9 = vadd.f32 %v2148_v8, %v2147_v7  ;;  %v2150_v10 = vpop.f32.mrb[66].mxu1  ;;  %v817_v17 = vpack.c.bf16 %v793_v6, %v792_v5 }
 0x202   :  { %v2151_v18 = vpop.f32.mrb[67].mxu1 }
 0x203   :  { %v716_v21 = vadd.f32 %v2149_v9, %v2821_v19  ;;  %v2152_v22 = vadd.f32 %v2151_v18, %v2150_v10  ;;  %2272 = vmatmul.mubr.bf16.gmra.mrb[44].mxu0 %v817_v17 }
 0x205   :  { %v719_v24 = vadd.f32 %v2152_v22, %v2821_v19  ;;  %v794_v25 = vmax.f32 %v716_v21, 0.0 }
 0x207   :  { %v795_v27 = vmax.f32 %v719_v24, 0.0  ;;  %v2153_v28 = vpop.f32.mrb[68].mxu1 }
 0x208   :  { %v2154_v30 = vpop.f32.mrb[69].mxu1 }
 0x209   :  { %v2155_v31 = vadd.f32 %v2154_v30, %v2153_v28  ;;  %v2156_v32 = vpop.f32.mrb[70].mxu1  ;;  %v818_v33 = vpack.c.bf16 %v795_v27, %v794_v25 }
 0x20a   :  { %v2157_v34 = vpop.f32.mrb[71].mxu1 }
 0x20b   :  { %v724_v35 = vadd.f32 %v2155_v31, %v2821_v19  ;;  %v2158_v36 = vadd.f32 %v2157_v34, %v2156_v32  ;;  %2275 = vmatprep.mubr.bf16.mxu0 %v818_v33 }
 0x20d   :  { %v727_v37 = vadd.f32 %v2158_v36, %v2821_v19  ;;  %v796_v38 = vmax.f32 %v724_v35, 0.0 }
 0x20f   :  { %v797_v15 = vmax.f32 %v727_v37, 0.0  ;;  %v2159_v16 = vpop.f32.mrb[72].mxu1 }
 0x210   :  { %v2160_v44 = vpop.f32.mrb[73].mxu1 }
 0x211   :  { %v2161_v47 = vadd.f32 %v2160_v44, %v2159_v16  ;;  %v2162_v13 = vpop.f32.mrb[74].mxu1  ;;  %v819_v48 = vpack.c.bf16 %v797_v15, %v796_v38 }
 0x212   :  { %v2163_v51 = vpop.f32.mrb[75].mxu1 }
 0x213   :  { %v732_v20 = vadd.f32 %v2161_v47, %v2821_v19  ;;  %v2164_v23 = vadd.f32 %v2163_v51, %v2162_v13  ;;  %2276 = vmatmul.mubr.bf16.gmra.mrb[48].mxu0 %v819_v48 }
 0x215   :  { %v735_v52 = vadd.f32 %v2164_v23, %v2821_v19  ;;  %v798_v55 = vmax.f32 %v732_v20, 0.0 }
 0x217   :  { %v799_v26 = vmax.f32 %v735_v52, 0.0  ;;  %v2165_v29 = vpop.f32.mrb[76].mxu1  ;;  %v2386_v52 = vld [vmem:[%s3333_s9] ss:$8 sps:$4 sm:$0xff]  }
 0x218   :  { %v2166_v39 = vpop.f32.mrb[77].mxu1 }
 0x219   :  { %v2167_v40 = vadd.f32 %v2166_v39, %v2165_v29  ;;  %v2168_v41 = vpop.f32.mrb[78].mxu1  ;;  %v820_v42 = vpack.c.bf16 %v799_v26, %v798_v55  ;;  %v2388_v55 = vld [vmem:[%s3333_s9 + $0x4] ss:$8 sps:$4 sm:$0xff]   ;;  %v2883_v26 = vld [vmem:[%s3332_s6] ss:$0 sm:$0xff] }
 0x21a   :  { %v2169_v43 = vpop.f32.mrb[79].mxu1  ;;  %1494 = vmatprep.subr.bf16.mxu0 %v2388_v55  ;;  %v2389_v39 = vld [vmem:[%s3333_s9 + $0x10] ss:$8 sps:$4 sm:$0xff]  }
 0x21b   :  { %v740_v45 = vadd.f32 %v2167_v40, %v2821_v19  ;;  %v2170_v46 = vadd.f32 %v2169_v43, %v2168_v41  ;;  %2279 = vmatprep.mubr.bf16.mxu0 %v820_v42  ;;  %1495 = vmatpush1.bf16.msra.mxu0 %v2386_v52  ;;  %v2394_v42 = vld [vmem:[%s3333_s9 + $0x24] ss:$8 sps:$4 sm:$0xff]  }
 0x21d   :  { %v743_v49 = vadd.f32 %v2170_v46, %v2821_v19  ;;  %v800_v50 = vmax.f32 %v740_v45, 0.0 }
 0x21f   :  { %v801_v53 = vmax.f32 %v743_v49, 0.0  ;;  %v2171_v54 = vpop.f32.mrb[80].mxu1 }
 0x220   :  { %v2172_v56 = vpop.f32.mrb[81].mxu1 }
 0x221   :  { %v2173_v57 = vadd.f32 %v2172_v56, %v2171_v54  ;;  %v2174_v58 = vpop.f32.mrb[82].mxu1  ;;  %v821_v59 = vpack.c.bf16 %v801_v53, %v800_v50  ;;  %v2392_v53 = vld [vmem:[%s3333_s9 + $0x20] ss:$8 sps:$4 sm:$0xff]  }
 0x222   :  { %v2175_v60 = vpop.f32.mrb[83].mxu1 }
 0x223   :  { %v748_v61 = vadd.f32 %v2173_v57, %v2821_v19  ;;  %v2176_v62 = vadd.f32 %v2175_v60, %v2174_v58  ;;  %2280 = vmatmul.mubr.bf16.gmra.mrb[52].mxu0 %v821_v59  ;;  %v2397_v57 = vld [vmem:[%s3333_s9 + $0x34] ss:$8 sps:$4 sm:$0xff]  }
 0x225   :  { %v751_v63 = vadd.f32 %v2176_v62, %v2821_v19  ;;  %v802_v0 = vmax.f32 %v748_v61, 0.0  ;;  %v2395_v62 = vld [vmem:[%s3333_s9 + $0x30] ss:$8 sps:$4 sm:$0xff]  }
 0x227   :  { %v803_v2 = vmax.f32 %v751_v63, 0.0  ;;  %v2177_v3 = vpop.f32.mrb[84].mxu1  ;;  %v2400_v63 = vld [vmem:[%s3333_s9 + $0x44] ss:$8 sps:$4 sm:$0xff]  }
 0x228   :  { %v2178_v4 = vpop.f32.mrb[85].mxu1 }
 0x229   :  { %v2179_v5 = vadd.f32 %v2178_v4, %v2177_v3  ;;  %v2180_v6 = vpop.f32.mrb[86].mxu1  ;;  %v822_v7 = vpack.c.bf16 %v803_v2, %v802_v0  ;;  %v2398_v0 = vld [vmem:[%s3333_s9 + $0x40] ss:$8 sps:$4 sm:$0xff]   ;;  %v2403_v2 = vld [vmem:[%s3333_s9 + $0x54] ss:$8 sps:$4 sm:$0xff]  }
 0x22a   :  { %v2181_v8 = vpop.f32.mrb[87].mxu1  ;;  %v2401_v4 = vld [vmem:[%s3333_s9 + $0x50] ss:$8 sps:$4 sm:$0xff]  }
 0x22b   :  { %v756_v9 = vadd.f32 %v2179_v5, %v2821_v19  ;;  %v2182_v10 = vadd.f32 %v2181_v8, %v2180_v6  ;;  %2283 = vmatprep.mubr.bf16.mxu0 %v822_v7  ;;  %v2406_v7 = vld [vmem:[%s3333_s9 + $0x64] ss:$8 sps:$4 sm:$0xff]  }
 0x22d   :  { %v759_v17 = vadd.f32 %v2182_v10, %v2821_v19  ;;  %v804_v18 = vmax.f32 %v756_v9, 0.0 }
 0x22f   :  { %v805_v21 = vmax.f32 %v759_v17, 0.0  ;;  %v2183_v22 = vpop.f32.mrb[88].mxu1 }
 0x230   :  { %v2184_v24 = vpop.f32.mrb[89].mxu1 }
 0x231   :  { %v2185_v25 = vadd.f32 %v2184_v24, %v2183_v22  ;;  %v2186_v27 = vpop.f32.mrb[90].mxu1  ;;  %v823_v28 = vpack.c.bf16 %v805_v21, %v804_v18  ;;  %v2404_v21 = vld [vmem:[%s3333_s9 + $0x60] ss:$8 sps:$4 sm:$0xff]  }
 0x232   :  { %v2187_v30 = vpop.f32.mrb[91].mxu1 }
 0x233   :  { %v764_v31 = vadd.f32 %v2185_v25, %v2821_v19  ;;  %v2188_v32 = vadd.f32 %v2187_v30, %v2186_v27  ;;  %2284 = vmatmul.mubr.bf16.gmra.mrb[56].mxu0 %v823_v28 }
 0x235   :  { %v767_v33 = vadd.f32 %v2188_v32, %v2821_v19  ;;  %v806_v34 = vmax.f32 %v764_v31, 0.0 }
 0x237   :  { %v807_v35 = vmax.f32 %v767_v33, 0.0  ;;  %v2189_v36 = vpop.f32.mrb[92].mxu1 }
 0x238   :  { %v2190_v37 = vpop.f32.mrb[93].mxu1 }
 0x239   :  { %v2191_v38 = vadd.f32 %v2190_v37, %v2189_v36  ;;  %v2192_v15 = vpop.f32.mrb[94].mxu1  ;;  %v824_v16 = vpack.c.bf16 %v807_v35, %v806_v34 }
 0x23a   :  { %v2193_v44 = vpop.f32.mrb[95].mxu1 }
 0x23b   :  { %v772_v47 = vadd.f32 %v2191_v38, %v2821_v19  ;;  %v2194_v13 = vadd.f32 %v2193_v44, %v2192_v15  ;;  %2287 = vmatprep.mubr.bf16.mxu0 %v824_v16 }
 0x23d   :  { %v775_v48 = vadd.f32 %v2194_v13, %v2821_v19  ;;  %v808_v51 = vmax.f32 %v772_v47, 0.0  ;;  %v2391_v19 = vld [vmem:[%s3333_s9 + $0x14] ss:$8 sps:$4 sm:$0xff]  }
 0x23e   :  { %1496 = vmatprep.subr.bf16.mxu0 %v2391_v19 }
 0x23f   :  { %v809_v20 = vmax.f32 %v775_v48, 0.0  ;;  %1497 = vmatpush1.bf16.msra.mxu0 %v2389_v39 }
 0x240   :  { %1498 = vmatprep.subr.bf16.mxu0 %v2394_v42 }
 0x241   :  { %v825_v23 = vpack.c.bf16 %v809_v20, %v808_v51 }
 0x243   :  { %2288 = vmatmul.mubr.bf16.gmra.mrb[60].mxu0 %v825_v23 }
 0x244   :  { %1526 = vmatprep.mubr.bf16.mxu0 %v2410_v1  ;;  %1499 = vmatpush1.bf16.msra.mxu0 %v2392_v53 }
 0x245   :  { %1500 = vmatprep.subr.bf16.mxu0 %v2397_v57 }
 0x248   :  { %1501 = vmatpush1.bf16.msra.mxu0 %v2395_v62 }
 0x249   :  { %1502 = vmatprep.subr.bf16.mxu0 %v2400_v63 }
 0x24c   :  { %1503 = vmatpush1.bf16.msra.mxu0 %v2398_v0 }
 0x24d   :  { %1504 = vmatprep.subr.bf16.mxu0 %v2403_v2 }
 0x250   :  { %1505 = vmatpush1.bf16.msra.mxu0 %v2401_v4 }
 0x251   :  { %1506 = vmatprep.subr.bf16.mxu0 %v2406_v7 }
 0x254   :  { %1507 = vmatpush1.bf16.msra.mxu0 %v2404_v21 }
 0x2a6   :  { %v2261_v29 = vpop.f32.mrb[32].mxu0 }
 0x2a7   :  { %v940_v40 = vadd.f32 %v2261_v29, %v2883_v26  ;;  %v931_v41 = vpop.f32.mrb[33].mxu0 }
 0x2a8   :  { %v932_v43 = vadd.f32 %v2883_v26, %v931_v41  ;;  %v2262_v45 = vpop.f32.mrb[34].mxu0 }
 0x2a9   :  { %v943_v46 = vadd.f32 %v2262_v45, %v2883_v26  ;;  %v934_v49 = vpop.f32.mrb[35].mxu0  ;;  %v1060_v54 = vmax.f32 %v940_v40, 0.0 }
 0x2aa   :  { %v935_v50 = vadd.f32 %v2883_v26, %v934_v49  ;;  %v1058_v58 = vmax.f32 %v932_v43, 0.0 }
 0x2ab   :  { %v1061_v56 = vmax.f32 %v943_v46, 0.0 }
 0x2ac   :  { %v1059_v59 = vmax.f32 %v935_v50, 0.0 }
 0x2ad   :  { %v1091_v60 = vpack.c.bf16 %v1061_v56, %v1060_v54 }
 0x2ae   :  { %v1090_v61 = vpack.c.bf16 %v1059_v59, %v1058_v58 }
 0x2b0   :  { %2307 = vmatprep.mubr.bf16.mxu1 %v1090_v61 }
 0x2b1   :  { %2308 = vmatmul.mubr.bf16.vlgmr.msra.gmra.mrb[96].mxu1 %v1091_v60 }
 0x2b6   :  { %v2265_v3 = vpop.f32.mrb[36].mxu0 }
 0x2b7   :  { %v956_v5 = vadd.f32 %v2265_v3, %v2883_v26  ;;  %v947_v6 = vpop.f32.mrb[37].mxu0 }
 0x2b8   :  { %v948_v8 = vadd.f32 %v2883_v26, %v947_v6  ;;  %v2266_v9 = vpop.f32.mrb[38].mxu0 }
 0x2b9   :  { %v959_v10 = vadd.f32 %v2266_v9, %v2883_v26  ;;  %v950_v17 = vpop.f32.mrb[39].mxu0  ;;  %v1064_v22 = vmax.f32 %v956_v5, 0.0 }
 0x2ba   :  { %v951_v18 = vadd.f32 %v2883_v26, %v950_v17  ;;  %v1062_v25 = vmax.f32 %v948_v8, 0.0 }
 0x2bb   :  { %v1065_v24 = vmax.f32 %v959_v10, 0.0 }
 0x2bc   :  { %v1063_v27 = vmax.f32 %v951_v18, 0.0 }
 0x2bd   :  { %v1093_v28 = vpack.c.bf16 %v1065_v24, %v1064_v22 }
 0x2be   :  { %v1092_v30 = vpack.c.bf16 %v1063_v27, %v1062_v25 }
 0x2c0   :  { %2311 = vmatprep.mubr.bf16.mxu1 %v1092_v30 }
 0x2c1   :  { %2312 = vmatmul.mubr.bf16.gmra.mrb[100].mxu1 %v1093_v28 }
 0x2c6   :  { %v2269_v31 = vpop.f32.mrb[40].mxu0 }
 0x2c7   :  { %v972_v32 = vadd.f32 %v2269_v31, %v2883_v26  ;;  %v963_v33 = vpop.f32.mrb[41].mxu0 }
 0x2c8   :  { %v964_v34 = vadd.f32 %v2883_v26, %v963_v33  ;;  %v2270_v35 = vpop.f32.mrb[42].mxu0  ;;  %v2407_v33 = vld [vmem:[%s3333_s9 + $0x70] ss:$8 sps:$4 sm:$0xff]  }
 0x2c9   :  { %v975_v36 = vadd.f32 %v2270_v35, %v2883_v26  ;;  %v966_v37 = vpop.f32.mrb[43].mxu0  ;;  %v1068_v15 = vmax.f32 %v972_v32, 0.0 }
 0x2ca   :  { %v967_v38 = vadd.f32 %v2883_v26, %v966_v37  ;;  %v1066_v44 = vmax.f32 %v964_v34, 0.0  ;;  %v2409_v34 = vld [vmem:[%s3333_s9 + $0x74] ss:$8 sps:$4 sm:$0xff]  }
 0x2cb   :  { %v1069_v16 = vmax.f32 %v975_v36, 0.0  ;;  %1508 = vmatprep.subr.bf16.mxu0 %v2409_v34 }
 0x2cc   :  { %v1067_v47 = vmax.f32 %v967_v38, 0.0  ;;  %1509 = vmatpush1.bf16.msra.mxu0 %v2407_v33 }
 0x2cd   :  { %v1095_v13 = vpack.c.bf16 %v1069_v16, %v1068_v15 }
 0x2ce   :  { %v1094_v48 = vpack.c.bf16 %v1067_v47, %v1066_v44 }
 0x2d0   :  { %2315 = vmatprep.mubr.bf16.mxu1 %v1094_v48 }
 0x2d1   :  { %2316 = vmatmul.mubr.bf16.gmra.mrb[104].mxu1 %v1095_v13 }
 0x2d6   :  { %v2273_v51 = vpop.f32.mrb[44].mxu0 }
 0x2d7   :  { %v988_v20 = vadd.f32 %v2273_v51, %v2883_v26  ;;  %v979_v23 = vpop.f32.mrb[45].mxu0 }
 0x2d8   :  { %v980_v52 = vadd.f32 %v2883_v26, %v979_v23  ;;  %v2274_v55 = vpop.f32.mrb[46].mxu0 }
 0x2d9   :  { %v991_v19 = vadd.f32 %v2274_v55, %v2883_v26  ;;  %v982_v29 = vpop.f32.mrb[47].mxu0  ;;  %v1072_v40 = vmax.f32 %v988_v20, 0.0 }
 0x2da   :  { %v983_v39 = vadd.f32 %v2883_v26, %v982_v29  ;;  %v1070_v42 = vmax.f32 %v980_v52, 0.0 }
 0x2db   :  { %v1073_v41 = vmax.f32 %v991_v19, 0.0 }
 0x2dc   :  { %v1071_v43 = vmax.f32 %v983_v39, 0.0 }
 0x2dd   :  { %v1097_v45 = vpack.c.bf16 %v1073_v41, %v1072_v40 }
 0x2de   :  { %v1096_v46 = vpack.c.bf16 %v1071_v43, %v1070_v42 }
 0x2e0   :  { %2319 = vmatprep.mubr.bf16.mxu1 %v1096_v46  ;;  %v2962_v46 = vld [vmem:[%s3334_s8] ss:$0 sm:$0xff] }
 0x2e1   :  { %2320 = vmatmul.mubr.bf16.gmra.mrb[108].mxu1 %v1097_v45 }
 0x2e6   :  { %v2277_v49 = vpop.f32.mrb[48].mxu0 }
 0x2e7   :  { %v1004_v50 = vadd.f32 %v2277_v49, %v2883_v26  ;;  %v995_v53 = vpop.f32.mrb[49].mxu0 }
 0x2e8   :  { %v996_v54 = vadd.f32 %v2883_v26, %v995_v53  ;;  %v2278_v56 = vpop.f32.mrb[50].mxu0 }
 0x2e9   :  { %v1007_v57 = vadd.f32 %v2278_v56, %v2883_v26  ;;  %v998_v58 = vpop.f32.mrb[51].mxu0  ;;  %v1076_v60 = vmax.f32 %v1004_v50, 0.0 }
 0x2ea   :  { %v999_v59 = vadd.f32 %v2883_v26, %v998_v58  ;;  %v1074_v62 = vmax.f32 %v996_v54, 0.0 }
 0x2eb   :  { %v1077_v61 = vmax.f32 %v1007_v57, 0.0 }
 0x2ec   :  { %v1075_v63 = vmax.f32 %v999_v59, 0.0 }
 0x2ed   :  { %v1099_v0 = vpack.c.bf16 %v1077_v61, %v1076_v60 }
 0x2ee   :  { %v1098_v2 = vpack.c.bf16 %v1075_v63, %v1074_v62 }
 0x2f0   :  { %2323 = vmatprep.mubr.bf16.mxu1 %v1098_v2 }
 0x2f1   :  { %2324 = vmatmul.mubr.bf16.gmra.mrb[112].mxu1 %v1099_v0 }
 0x2f6   :  { %v2281_v3 = vpop.f32.mrb[52].mxu0 }
 0x2f7   :  { %v1020_v4 = vadd.f32 %v2281_v3, %v2883_v26  ;;  %v1011_v5 = vpop.f32.mrb[53].mxu0 }
 0x2f8   :  { %v1012_v6 = vadd.f32 %v2883_v26, %v1011_v5  ;;  %v2282_v7 = vpop.f32.mrb[54].mxu0 }
 0x2f9   :  { %v1023_v8 = vadd.f32 %v2282_v7, %v2883_v26  ;;  %v1014_v9 = vpop.f32.mrb[55].mxu0  ;;  %v1080_v17 = vmax.f32 %v1020_v4, 0.0 }
 0x2fa   :  { %v1015_v10 = vadd.f32 %v2883_v26, %v1014_v9  ;;  %v1078_v21 = vmax.f32 %v1012_v6, 0.0 }
 0x2fb   :  { %v1081_v18 = vmax.f32 %v1023_v8, 0.0 }
 0x2fc   :  { %v1079_v22 = vmax.f32 %v1015_v10, 0.0 }
 0x2fd   :  { %v1101_v24 = vpack.c.bf16 %v1081_v18, %v1080_v17 }
 0x2fe   :  { %v1100_v25 = vpack.c.bf16 %v1079_v22, %v1078_v21 }
 0x300   :  { %2327 = vmatprep.mubr.bf16.mxu1 %v1100_v25 }
 0x301   :  { %2328 = vmatmul.mubr.bf16.gmra.mrb[116].mxu1 %v1101_v24 }
 0x306   :  { %v2285_v27 = vpop.f32.mrb[56].mxu0 }
 0x307   :  { %v1036_v28 = vadd.f32 %v2285_v27, %v2883_v26  ;;  %v1027_v30 = vpop.f32.mrb[57].mxu0 }
 0x308   :  { %v1028_v31 = vadd.f32 %v2883_v26, %v1027_v30  ;;  %v2286_v32 = vpop.f32.mrb[58].mxu0 }
 0x309   :  { %v1039_v35 = vadd.f32 %v2286_v32, %v2883_v26  ;;  %v1030_v36 = vpop.f32.mrb[59].mxu0  ;;  %v1084_v38 = vmax.f32 %v1036_v28, 0.0 }
 0x30a   :  { %v1031_v37 = vadd.f32 %v2883_v26, %v1030_v36  ;;  %v1082_v16 = vmax.f32 %v1028_v31, 0.0 }
 0x30b   :  { %v1085_v15 = vmax.f32 %v1039_v35, 0.0 }
 0x30c   :  { %v1083_v44 = vmax.f32 %v1031_v37, 0.0 }
 0x30d   :  { %v1103_v47 = vpack.c.bf16 %v1085_v15, %v1084_v38 }
 0x30e   :  { %v1102_v13 = vpack.c.bf16 %v1083_v44, %v1082_v16 }
 0x310   :  { %2331 = vmatprep.mubr.bf16.mxu1 %v1102_v13 }
 0x311   :  { %2332 = vmatmul.mubr.bf16.gmra.mrb[120].mxu1 %v1103_v47 }
 0x316   :  { %v2289_v48 = vpop.f32.mrb[60].mxu0 }
 0x317   :  { %v1052_v51 = vadd.f32 %v2289_v48, %v2883_v26  ;;  %v1043_v20 = vpop.f32.mrb[61].mxu0 }
 0x318   :  { %v1044_v23 = vadd.f32 %v2883_v26, %v1043_v20  ;;  %v2290_v52 = vpop.f32.mrb[62].mxu0 }
 0x319   :  { %v1055_v55 = vadd.f32 %v2290_v52, %v2883_v26  ;;  %v1046_v19 = vpop.f32.mrb[63].mxu0  ;;  %v1088_v39 = vmax.f32 %v1052_v51, 0.0 }
 0x31a   :  { %v1047_v29 = vadd.f32 %v2883_v26, %v1046_v19  ;;  %v1086_v41 = vmax.f32 %v1044_v23, 0.0 }
 0x31b   :  { %v1089_v40 = vmax.f32 %v1055_v55, 0.0 }
 0x31c   :  { %v1087_v42 = vmax.f32 %v1047_v29, 0.0 }
 0x31d   :  { %v1105_v43 = vpack.c.bf16 %v1089_v40, %v1088_v39 }
 0x31e   :  { %v1104_v45 = vpack.c.bf16 %v1087_v42, %v1086_v41 }
 0x320   :  { %2335 = vmatprep.mubr.bf16.mxu1 %v1104_v45 }
 0x321   :  { %2336 = vmatmul.mubr.bf16.gmra.mrb[124].mxu1 %v1105_v43 }
 0x384   :  { %v2309_v49 = vpop.f32.mrb[96].mxu1 }
 0x385   :  { %v1220_v50 = vadd.f32 %v2309_v49, %v2962_v46  ;;  %v1211_v53 = vpop.f32.mrb[97].mxu1 }
 0x386   :  { %v1212_v54 = vadd.f32 %v2962_v46, %v1211_v53  ;;  %v2310_v26 = vpop.f32.mrb[98].mxu1 }
 0x387   :  { %v1223_v56 = vadd.f32 %v2310_v26, %v2962_v46  ;;  %v1214_v57 = vpop.f32.mrb[99].mxu1  ;;  %v1340_v59 = vmax.f32 %v1220_v50, 0.0 }
 0x388   :  { %v1215_v58 = vadd.f32 %v2962_v46, %v1214_v57  ;;  %v1338_v61 = vmax.f32 %v1212_v54, 0.0 }
 0x389   :  { %v1341_v60 = vmax.f32 %v1223_v56, 0.0 }
 0x38a   :  { %v1339_v62 = vmax.f32 %v1215_v58, 0.0 }
 0x38b   :  { %v1371_v63 = vpack.c.bf16 %v1341_v60, %v1340_v59 }
 0x38c   :  { %v1370_v0 = vpack.c.bf16 %v1339_v62, %v1338_v61 }
 0x38e   :  { %1527 = vmatmul.mubr.bf16.vlgmr.msra.gmra.mrb[64].mxu0 %v1370_v0 }
 0x38f   :  { %1536 = vmatprep.mubr.bf16.mxu0 %v2410_v1 }
 0x394   :  { %v2313_v2 = vpop.f32.mrb[100].mxu1 }
 0x395   :  { %v1236_v3 = vadd.f32 %v2313_v2, %v2962_v46  ;;  %v1227_v4 = vpop.f32.mrb[101].mxu1 }
 0x396   :  { %v1228_v5 = vadd.f32 %v2962_v46, %v1227_v4  ;;  %v2314_v6 = vpop.f32.mrb[102].mxu1  ;;  %1537 = vmatmul.mubr.bf16.gmra.mrb[68].mxu0 %v1371_v63 }
 0x397   :  { %v1239_v7 = vadd.f32 %v2314_v6, %v2962_v46  ;;  %v1230_v8 = vpop.f32.mrb[103].mxu1  ;;  %1546 = vmatprep.mubr.bf16.mxu0 %v2410_v1  ;;  %v1344_v10 = vmax.f32 %v1236_v3, 0.0 }
 0x398   :  { %v1231_v9 = vadd.f32 %v2962_v46, %v1230_v8  ;;  %v1342_v18 = vmax.f32 %v1228_v5, 0.0 }
 0x399   :  { %v1345_v17 = vmax.f32 %v1239_v7, 0.0 }
 0x39a   :  { %v1343_v21 = vmax.f32 %v1231_v9, 0.0 }
 0x39b   :  { %v1373_v22 = vpack.c.bf16 %v1345_v17, %v1344_v10 }
 0x39c   :  { %v1372_v24 = vpack.c.bf16 %v1343_v21, %v1342_v18 }
 0x39e   :  { %1547 = vmatmul.mubr.bf16.gmra.mrb[72].mxu0 %v1372_v24 }
 0x39f   :  { %1556 = vmatprep.mubr.bf16.mxu0 %v2410_v1 }
 0x3a4   :  { %v2317_v25 = vpop.f32.mrb[104].mxu1 }
 0x3a5   :  { %v1252_v27 = vadd.f32 %v2317_v25, %v2962_v46  ;;  %v1243_v28 = vpop.f32.mrb[105].mxu1 }
 0x3a6   :  { %v1244_v30 = vadd.f32 %v2962_v46, %v1243_v28  ;;  %v2318_v31 = vpop.f32.mrb[106].mxu1  ;;  %1557 = vmatmul.mubr.bf16.gmra.mrb[76].mxu0 %v1373_v22 }
 0x3a7   :  { %v1255_v32 = vadd.f32 %v2318_v31, %v2962_v46  ;;  %v1246_v33 = vpop.f32.mrb[107].mxu1  ;;  %1566 = vmatprep.mubr.bf16.mxu0 %v2410_v1  ;;  %v1348_v35 = vmax.f32 %v1252_v27, 0.0 }
 0x3a8   :  { %v1247_v34 = vadd.f32 %v2962_v46, %v1246_v33  ;;  %v1346_v37 = vmax.f32 %v1244_v30, 0.0 }
 0x3a9   :  { %v1349_v36 = vmax.f32 %v1255_v32, 0.0 }
 0x3aa   :  { %v1347_v38 = vmax.f32 %v1247_v34, 0.0 }
 0x3ab   :  { %v1375_v15 = vpack.c.bf16 %v1349_v36, %v1348_v35 }
 0x3ac   :  { %v1374_v16 = vpack.c.bf16 %v1347_v38, %v1346_v37 }
 0x3ae   :  { %1567 = vmatmul.mubr.bf16.gmra.mrb[80].mxu0 %v1374_v16 }
 0x3af   :  { %1576 = vmatprep.mubr.bf16.mxu0 %v2410_v1 }
 0x3b4   :  { %v2321_v44 = vpop.f32.mrb[108].mxu1 }
 0x3b5   :  { %v1268_v47 = vadd.f32 %v2321_v44, %v2962_v46  ;;  %v1259_v13 = vpop.f32.mrb[109].mxu1 }
 0x3b6   :  { %v1260_v48 = vadd.f32 %v2962_v46, %v1259_v13  ;;  %v2322_v51 = vpop.f32.mrb[110].mxu1  ;;  %1577 = vmatmul.mubr.bf16.gmra.mrb[84].mxu0 %v1375_v15 }
 0x3b7   :  { %v1271_v20 = vadd.f32 %v2322_v51, %v2962_v46  ;;  %v1262_v23 = vpop.f32.mrb[111].mxu1  ;;  %1586 = vmatprep.mubr.bf16.mxu0 %v2410_v1  ;;  %v1352_v55 = vmax.f32 %v1268_v47, 0.0 }
 0x3b8   :  { %v1263_v52 = vadd.f32 %v2962_v46, %v1262_v23  ;;  %v1350_v29 = vmax.f32 %v1260_v48, 0.0 }
 0x3b9   :  { %v1353_v19 = vmax.f32 %v1271_v20, 0.0 }
 0x3ba   :  { %v1351_v39 = vmax.f32 %v1263_v52, 0.0 }
 0x3bb   :  { %v1377_v40 = vpack.c.bf16 %v1353_v19, %v1352_v55 }
 0x3bc   :  { %v1376_v41 = vpack.c.bf16 %v1351_v39, %v1350_v29  ;;  %v1751_v39 = vld [vmem:[%s3335_s11] sm:$0x3] }
 0x3be   :  { %1587 = vmatmul.mubr.bf16.gmra.mrb[88].mxu0 %v1376_v41  ;;  %v1402_v41 = vld [vmem:[%s3336_s10] sm:$0x3] }
 0x3bf   :  { %1596 = vmatprep.mubr.bf16.mxu0 %v2410_v1 }
 0x3c4   :  { %v2325_v42 = vpop.f32.mrb[112].mxu1 }
 0x3c5   :  { %v1284_v43 = vadd.f32 %v2325_v42, %v2962_v46  ;;  %v1275_v45 = vpop.f32.mrb[113].mxu1  ;;  %v3019_v42 = vrot.slane %v1402_v41, %v2675_v12 }
 0x3c6   :  { %v1276_v49 = vadd.f32 %v2962_v46, %v1275_v45  ;;  %v2326_v50 = vpop.f32.mrb[114].mxu1  ;;  %1597 = vmatmul.mubr.bf16.gmra.mrb[92].mxu0 %v1377_v40  ;;  %v1752_v40 = vunpack.c.l.bf16 %v1751_v39 }
 0x3c7   :  { %v1287_v53 = vadd.f32 %v2326_v50, %v2962_v46  ;;  %v1278_v54 = vpop.f32.mrb[115].mxu1  ;;  %1606 = vmatprep.mubr.bf16.mxu0 %v2410_v1  ;;  %v1356_v56 = vmax.f32 %v1284_v43, 0.0 }
 0x3c8   :  { %v1279_v26 = vadd.f32 %v2962_v46, %v1278_v54  ;;  %v1354_v58 = vmax.f32 %v1276_v49, 0.0  ;;  %v1757_v43 = vrot.slane %v1752_v40, %v2675_v12 }
 0x3c9   :  { %v1357_v57 = vmax.f32 %v1287_v53, 0.0 }
 0x3ca   :  { %v1355_v59 = vmax.f32 %v1279_v26, 0.0  ;;  %v3028_v54 = vrot.slane %v1757_v43, %v2675_v12 }
 0x3cb   :  { %v1379_v60 = vpack.c.bf16 %v1357_v57, %v1356_v56 }
 0x3cc   :  { %v1378_v61 = vpack.c.bf16 %v1355_v59, %v1354_v58 }
 0x3ce   :  { %1607 = vmatmul.mubr.bf16.gmra.mrb[96].mxu0 %v1378_v61 }
 0x3cf   :  { %1616 = vmatprep.mubr.bf16.mxu0 %v2410_v1 }
 0x3d4   :  { %v2329_v62 = vpop.f32.mrb[116].mxu1 }
 0x3d5   :  { %v1300_v63 = vadd.f32 %v2329_v62, %v2962_v46  ;;  %v1291_v0 = vpop.f32.mrb[117].mxu1 }
 0x3d6   :  { %v1292_v2 = vadd.f32 %v2962_v46, %v1291_v0  ;;  %v2330_v3 = vpop.f32.mrb[118].mxu1  ;;  %1617 = vmatmul.mubr.bf16.gmra.mrb[100].mxu0 %v1379_v60 }
 0x3d7   :  { %v1303_v4 = vadd.f32 %v2330_v3, %v2962_v46  ;;  %v1294_v5 = vpop.f32.mrb[119].mxu1  ;;  %1626 = vmatprep.mubr.bf16.mxu0 %v2410_v1  ;;  %v1360_v7 = vmax.f32 %v1300_v63, 0.0  ;;  %v18_v63 = vstv %s3337_s12 }
 0x3d8   :  { %v1295_v6 = vadd.f32 %v2962_v46, %v1294_v5  ;;  %v1358_v9 = vmax.f32 %v1292_v2, 0.0  ;;  %19 = vst [vmem:[#allocation2] sm:$0x1] %v18_v63 }
 0x3d9   :  { %v1361_v8 = vmax.f32 %v1303_v4, 0.0 }
 0x3da   :  { %v1359_v10 = vmax.f32 %v1295_v6, 0.0 }
 0x3db   :  { %v1381_v17 = vpack.c.bf16 %v1361_v8, %v1360_v7 }
 0x3dc   :  { %v1380_v18 = vpack.c.bf16 %v1359_v10, %v1358_v9 }
 0x3de   :  { %1627 = vmatmul.mubr.bf16.gmra.mrb[104].mxu0 %v1380_v18 }
 0x3df   :  { %1636 = vmatprep.mubr.bf16.mxu0 %v2410_v1 }
 0x3e4   :  { %v2333_v21 = vpop.f32.mrb[120].mxu1 }
 0x3e5   :  { %v1316_v22 = vadd.f32 %v2333_v21, %v2962_v46  ;;  %v1307_v24 = vpop.f32.mrb[121].mxu1 }
 0x3e6   :  { %v1308_v25 = vadd.f32 %v2962_v46, %v1307_v24  ;;  %v2334_v27 = vpop.f32.mrb[122].mxu1  ;;  %1637 = vmatmul.mubr.bf16.gmra.mrb[108].mxu0 %v1381_v17 }
 0x3e7   :  { %v1319_v28 = vadd.f32 %v2334_v27, %v2962_v46  ;;  %v1310_v30 = vpop.f32.mrb[123].mxu1  ;;  %1646 = vmatprep.mubr.bf16.mxu0 %v2410_v1  ;;  %v1364_v32 = vmax.f32 %v1316_v22, 0.0 }
 0x3e8   :  { %v1311_v31 = vadd.f32 %v2962_v46, %v1310_v30  ;;  %v1362_v34 = vmax.f32 %v1308_v25, 0.0 }
 0x3e9   :  { %v1365_v33 = vmax.f32 %v1319_v28, 0.0 }
 0x3ea   :  { %v1363_v35 = vmax.f32 %v1311_v31, 0.0 }
 0x3eb   :  { %v1383_v36 = vpack.c.bf16 %v1365_v33, %v1364_v32 }
 0x3ec   :  { %v1382_v37 = vpack.c.bf16 %v1363_v35, %v1362_v34 }
 0x3ee   :  { %1647 = vmatmul.mubr.bf16.gmra.mrb[112].mxu0 %v1382_v37 }
 0x3ef   :  { %1656 = vmatprep.mubr.bf16.mxu0 %v2410_v1 }
 0x3f4   :  { %v2337_v38 = vpop.f32.mrb[124].mxu1 }
 0x3f5   :  { %v1332_v15 = vadd.f32 %v2337_v38, %v2962_v46  ;;  %v1323_v16 = vpop.f32.mrb[125].mxu1 }
 0x3f6   :  { %v1324_v44 = vadd.f32 %v2962_v46, %v1323_v16  ;;  %v2338_v47 = vpop.f32.mrb[126].mxu1  ;;  %1657 = vmatmul.mubr.bf16.gmra.mrb[116].mxu0 %v1383_v36 }
 0x3f7   :  { %v1335_v13 = vadd.f32 %v2338_v47, %v2962_v46  ;;  %v1326_v48 = vpop.f32.mrb[127].mxu1  ;;  %1666 = vmatprep.mubr.bf16.mxu0 %v2410_v1  ;;  %v1368_v20 = vmax.f32 %v1332_v15, 0.0 }
 0x3f8   :  { %v1327_v51 = vadd.f32 %v2962_v46, %v1326_v48  ;;  %v1366_v52 = vmax.f32 %v1324_v44, 0.0  ;;  %v1760_v46 = vsub.s32 2, %v2672_v11 }
 0x3f9   :  { %v1369_v23 = vmax.f32 %v1335_v13, 0.0 }
 0x3fa   :  { %v1367_v55 = vmax.f32 %v1327_v51, 0.0  ;;  %v1761_v45 = vrot.slane %v1752_v40, %v1760_v46 }
 0x3fb   :  { %v1385_v19 = vpack.c.bf16 %v1369_v23, %v1368_v20 }
 0x3fc   :  { %v1384_v29 = vpack.c.bf16 %v1367_v55, %v1366_v52  ;;  %v3032_v57 = vrot.slane %v1761_v45, %v2675_v12 }
 0x3fe   :  { %1667 = vmatmul.mubr.bf16.gmra.mrb[120].mxu0 %v1384_v29 }
 0x3ff   :  { %1676 = vmatprep.mubr.bf16.mxu0 %v2410_v1  ;;  %v3024_v1 = vrot.slane %v1402_v41, %v108_v14 }
 0x406   :  { %1677 = vmatmul.mubr.bf16.gmra.mrb[124].mxu0 %v1385_v19 }
 0x461   :  { %v1528_v49 = vpop.f32.mrb[64].mxu0 }
 0x462   :  { %v1529_v50 = vadd.f32 %v1528_v49, %v3019_v42  ;;  %v1530_v53 = vpop.f32.mrb[65].mxu0 }
 0x463   :  { %v1531_v26 = vadd.f32 %v1530_v53, %v3024_v1  ;;  %v1532_v56 = vpop.f32.mrb[66].mxu0 }
 0x464   :  { %v1687_v58 = vmax.f32 %v1529_v50, 0.0  ;;  %v1533_v59 = vadd.f32 %v1532_v56, %v3019_v42  ;;  %v1534_v11 = vpop.f32.mrb[67].mxu0 }
 0x465   :  { %v1688_v14 = vmax.f32 %v1531_v26, 0.0  ;;  %v1535_v60 = vadd.f32 %v1534_v11, %v3024_v1 }
 0x466   :  { %v1689_v61 = vmax.f32 %v1533_v59, 0.0  ;;  %v1772_v62 = vmul.f32 %v3028_v54, %v1687_v58 }
 0x467   :  { %v1690_v0 = vmax.f32 %v1535_v60, 0.0  ;;  %v1773_v2 = vmul.f32 %v3032_v57, %v1688_v14 }
 0x468   :  { %v1774_v12 = vmul.f32 %v3028_v54, %v1689_v61 }
 0x469   :  { %v1775_v3 = vmul.f32 %v3032_v57, %v1690_v0  ;;  %v1538_v4 = vpop.f32.mrb[68].mxu0  ;;  %v1836_v5 = vadd.f32 %v1773_v2, %v1772_v62 }
 0x46a   :  { %v1539_v6 = vadd.f32 %v1538_v4, %v3019_v42  ;;  %v1540_v7 = vpop.f32.mrb[69].mxu0 }
 0x46b   :  { %v1541_v8 = vadd.f32 %v1540_v7, %v3024_v1  ;;  %v1542_v9 = vpop.f32.mrb[70].mxu0  ;;  %1837 = vadd.xlane.f32.xlu0 %v1836_v5  ;;  %v1839_v10 = vadd.f32 %v1775_v3, %v1774_v12 }
 0x46c   :  { %v1691_v17 = vmax.f32 %v1539_v6, 0.0  ;;  %v1543_v18 = vadd.f32 %v1542_v9, %v3019_v42  ;;  %v1544_v21 = vpop.f32.mrb[71].mxu0 }
 0x46d   :  { %v1692_v22 = vmax.f32 %v1541_v8, 0.0  ;;  %v1545_v24 = vadd.f32 %v1544_v21, %v3024_v1 }
 0x46e   :  { %v1693_v25 = vmax.f32 %v1543_v18, 0.0  ;;  %v1776_v27 = vmul.f32 %v3028_v54, %v1691_v17 }
 0x46f   :  { %v1694_v28 = vmax.f32 %v1545_v24, 0.0  ;;  %1840 = vadd.xlane.f32.xlu0 %v1839_v10  ;;  %v1777_v30 = vmul.f32 %v3032_v57, %v1692_v22 }
 0x470   :  { %v1778_v31 = vmul.f32 %v3028_v54, %v1693_v25 }
 0x471   :  { %v1779_v32 = vmul.f32 %v3032_v57, %v1694_v28  ;;  %v1548_v33 = vpop.f32.mrb[72].mxu0  ;;  %v1842_v34 = vadd.f32 %v1777_v30, %v1776_v27 }
 0x472   :  { %v1549_v35 = vadd.f32 %v1548_v33, %v3019_v42  ;;  %v1550_v36 = vpop.f32.mrb[73].mxu0 }
 0x473   :  { %v1551_v37 = vadd.f32 %v1550_v36, %v3024_v1  ;;  %v1552_v38 = vpop.f32.mrb[74].mxu0  ;;  %1843 = vadd.xlane.f32.xlu1 %v1842_v34  ;;  %v1845_v15 = vadd.f32 %v1779_v32, %v1778_v31 }
 0x474   :  { %v1695_v16 = vmax.f32 %v1549_v35, 0.0  ;;  %v1553_v44 = vadd.f32 %v1552_v38, %v3019_v42  ;;  %v1554_v47 = vpop.f32.mrb[75].mxu0 }
 0x475   :  { %v1696_v13 = vmax.f32 %v1551_v37, 0.0  ;;  %v1555_v48 = vadd.f32 %v1554_v47, %v3024_v1 }
 0x476   :  { %v1780_v51 = vmul.f32 %v3028_v54, %v1695_v16  ;;  %v1697_v20 = vmax.f32 %v1553_v44, 0.0 }
 0x477   :  { %v1781_v23 = vmul.f32 %v3032_v57, %v1696_v13  ;;  %v1698_v52 = vmax.f32 %v1555_v48, 0.0  ;;  %1846 = vadd.xlane.f32.xlu1 %v1845_v15 }
 0x478   :  { %v1782_v55 = vmul.f32 %v3028_v54, %v1697_v20 }
 0x479   :  { %v1783_v19 = vmul.f32 %v3032_v57, %v1698_v52  ;;  %v1558_v29 = vpop.f32.mrb[76].mxu0  ;;  %v1848_v39 = vadd.f32 %v1781_v23, %v1780_v51 }
 0x47a   :  { %v1559_v40 = vadd.f32 %v1558_v29, %v3019_v42  ;;  %v1560_v41 = vpop.f32.mrb[77].mxu0 }
 0x47b   :  { %v1561_v46 = vadd.f32 %v1560_v41, %v3024_v1  ;;  %v1562_v43 = vpop.f32.mrb[78].mxu0  ;;  %1849 = vadd.xlane.f32.xlu0 %v1848_v39  ;;  %v1851_v45 = vadd.f32 %v1783_v19, %v1782_v55 }
 0x47c   :  { %v1699_v49 = vmax.f32 %v1559_v40, 0.0  ;;  %v1563_v50 = vadd.f32 %v1562_v43, %v3019_v42  ;;  %v1564_v53 = vpop.f32.mrb[79].mxu0 }
 0x47d   :  { %v1700_v26 = vmax.f32 %v1561_v46, 0.0  ;;  %v1565_v56 = vadd.f32 %v1564_v53, %v3024_v1  ;;  %1852 = vadd.xlane.f32.xlu1 %v1851_v45 }
 0x47e   :  { %v1784_v58 = vmul.f32 %v3028_v54, %v1699_v49  ;;  %v1701_v59 = vmax.f32 %v1563_v50, 0.0 }
 0x47f   :  { %v1785_v11 = vmul.f32 %v3032_v57, %v1700_v26  ;;  %v1702_v14 = vmax.f32 %v1565_v56, 0.0 }
 0x480   :  { %v1786_v60 = vmul.f32 %v3028_v54, %v1701_v59 }
 0x481   :  { %v1787_v61 = vmul.f32 %v3032_v57, %v1702_v14  ;;  %v1568_v62 = vpop.f32.mrb[80].mxu0  ;;  %v1854_v63 = vadd.f32 %v1785_v11, %v1784_v58 }
 0x482   :  { %v1569_v0 = vadd.f32 %v1568_v62, %v3019_v42  ;;  %v1570_v2 = vpop.f32.mrb[81].mxu0 }
 0x483   :  { %v1571_v12 = vadd.f32 %v1570_v2, %v3024_v1  ;;  %v1572_v3 = vpop.f32.mrb[82].mxu0  ;;  %1855 = vadd.xlane.f32.xlu0 %v1854_v63  ;;  %v1857_v4 = vadd.f32 %v1787_v61, %v1786_v60 }
 0x484   :  { %v1703_v5 = vmax.f32 %v1569_v0, 0.0  ;;  %v1573_v6 = vadd.f32 %v1572_v3, %v3019_v42  ;;  %v1574_v7 = vpop.f32.mrb[83].mxu0 }
 0x485   :  { %v1704_v8 = vmax.f32 %v1571_v12, 0.0  ;;  %v1575_v9 = vadd.f32 %v1574_v7, %v3024_v1  ;;  %1858 = vadd.xlane.f32.xlu1 %v1857_v4 }
 0x486   :  { %v1788_v10 = vmul.f32 %v3028_v54, %v1703_v5  ;;  %v1705_v17 = vmax.f32 %v1573_v6, 0.0 }
 0x487   :  { %v1789_v18 = vmul.f32 %v3032_v57, %v1704_v8  ;;  %v1706_v21 = vmax.f32 %v1575_v9, 0.0 }
 0x488   :  { %v1790_v22 = vmul.f32 %v3028_v54, %v1705_v17 }
 0x489   :  { %v1791_v24 = vmul.f32 %v3032_v57, %v1706_v21  ;;  %v1578_v25 = vpop.f32.mrb[84].mxu0  ;;  %v1860_v27 = vadd.f32 %v1789_v18, %v1788_v10 }
 0x48a   :  { %v1579_v28 = vadd.f32 %v1578_v25, %v3019_v42  ;;  %v1580_v30 = vpop.f32.mrb[85].mxu0 }
 0x48b   :  { %v1581_v31 = vadd.f32 %v1580_v30, %v3024_v1  ;;  %v1582_v32 = vpop.f32.mrb[86].mxu0  ;;  %1861 = vadd.xlane.f32.xlu0 %v1860_v27  ;;  %v1863_v33 = vadd.f32 %v1791_v24, %v1790_v22 }
 0x48c   :  { %v1707_v34 = vmax.f32 %v1579_v28, 0.0  ;;  %v1583_v35 = vadd.f32 %v1582_v32, %v3019_v42  ;;  %v1584_v36 = vpop.f32.mrb[87].mxu0 }
 0x48d   :  { %v1708_v37 = vmax.f32 %v1581_v31, 0.0  ;;  %v1585_v38 = vadd.f32 %v1584_v36, %v3024_v1  ;;  %1864 = vadd.xlane.f32.xlu1 %v1863_v33 }
 0x48e   :  { %v1792_v15 = vmul.f32 %v3028_v54, %v1707_v34  ;;  %v1709_v16 = vmax.f32 %v1583_v35, 0.0 }
 0x48f   :  { %v1793_v44 = vmul.f32 %v3032_v57, %v1708_v37  ;;  %v1710_v47 = vmax.f32 %v1585_v38, 0.0 }
 0x490   :  { %v1794_v13 = vmul.f32 %v3028_v54, %v1709_v16 }
 0x491   :  { %v1795_v48 = vmul.f32 %v3032_v57, %v1710_v47  ;;  %v1588_v51 = vpop.f32.mrb[88].mxu0  ;;  %v1866_v20 = vadd.f32 %v1793_v44, %v1792_v15 }
 0x492   :  { %v1589_v23 = vadd.f32 %v1588_v51, %v3019_v42  ;;  %v1590_v52 = vpop.f32.mrb[89].mxu0 }
 0x493   :  { %v1591_v55 = vadd.f32 %v1590_v52, %v3024_v1  ;;  %v1592_v19 = vpop.f32.mrb[90].mxu0  ;;  %1867 = vadd.xlane.f32.xlu0 %v1866_v20  ;;  %v1869_v29 = vadd.f32 %v1795_v48, %v1794_v13 }
 0x494   :  { %v1711_v39 = vmax.f32 %v1589_v23, 0.0  ;;  %v1593_v40 = vadd.f32 %v1592_v19, %v3019_v42  ;;  %v1594_v41 = vpop.f32.mrb[91].mxu0 }
 0x495   :  { %v1712_v46 = vmax.f32 %v1591_v55, 0.0  ;;  %v1595_v43 = vadd.f32 %v1594_v41, %v3024_v1  ;;  %1870 = vadd.xlane.f32.xlu1 %v1869_v29 }
 0x496   :  { %v1796_v45 = vmul.f32 %v3028_v54, %v1711_v39  ;;  %v1713_v49 = vmax.f32 %v1593_v40, 0.0 }
 0x497   :  { %v1797_v50 = vmul.f32 %v3032_v57, %v1712_v46  ;;  %v1714_v53 = vmax.f32 %v1595_v43, 0.0 }
 0x498   :  { %v1798_v26 = vmul.f32 %v3028_v54, %v1713_v49 }
 0x499   :  { %v1799_v56 = vmul.f32 %v3032_v57, %v1714_v53  ;;  %v1598_v58 = vpop.f32.mrb[92].mxu0  ;;  %v1872_v59 = vadd.f32 %v1797_v50, %v1796_v45 }
 0x49a   :  { %v1599_v11 = vadd.f32 %v1598_v58, %v3019_v42  ;;  %v1600_v14 = vpop.f32.mrb[93].mxu0 }
 0x49b   :  { %v1601_v60 = vadd.f32 %v1600_v14, %v3024_v1  ;;  %v1602_v61 = vpop.f32.mrb[94].mxu0  ;;  %1873 = vadd.xlane.f32.xlu0 %v1872_v59  ;;  %v1875_v62 = vadd.f32 %v1799_v56, %v1798_v26 }
 0x49c   :  { %v1715_v63 = vmax.f32 %v1599_v11, 0.0  ;;  %v1603_v0 = vadd.f32 %v1602_v61, %v3019_v42  ;;  %v1604_v2 = vpop.f32.mrb[95].mxu0 }
 0x49d   :  { %v1716_v12 = vmax.f32 %v1601_v60, 0.0  ;;  %v1605_v3 = vadd.f32 %v1604_v2, %v3024_v1  ;;  %1876 = vadd.xlane.f32.xlu1 %v1875_v62 }
 0x49e   :  { %v1800_v4 = vmul.f32 %v3028_v54, %v1715_v63  ;;  %v1717_v5 = vmax.f32 %v1603_v0, 0.0 }
 0x49f   :  { %v1801_v6 = vmul.f32 %v3032_v57, %v1716_v12  ;;  %v1718_v7 = vmax.f32 %v1605_v3, 0.0 }
 0x4a0   :  { %v1802_v8 = vmul.f32 %v3028_v54, %v1717_v5 }
 0x4a1   :  { %v1803_v9 = vmul.f32 %v3032_v57, %v1718_v7  ;;  %v1608_v10 = vpop.f32.mrb[96].mxu0  ;;  %v1878_v17 = vadd.f32 %v1801_v6, %v1800_v4 }
 0x4a2   :  { %v1609_v18 = vadd.f32 %v1608_v10, %v3019_v42  ;;  %v1610_v21 = vpop.f32.mrb[97].mxu0 }
 0x4a3   :  { %v1611_v22 = vadd.f32 %v1610_v21, %v3024_v1  ;;  %v1612_v24 = vpop.f32.mrb[98].mxu0  ;;  %1879 = vadd.xlane.f32.xlu0 %v1878_v17  ;;  %v1881_v25 = vadd.f32 %v1803_v9, %v1802_v8 }
 0x4a4   :  { %v1719_v27 = vmax.f32 %v1609_v18, 0.0  ;;  %v1613_v28 = vadd.f32 %v1612_v24, %v3019_v42  ;;  %v1614_v30 = vpop.f32.mrb[99].mxu0 }
 0x4a5   :  { %v1720_v31 = vmax.f32 %v1611_v22, 0.0  ;;  %v1615_v32 = vadd.f32 %v1614_v30, %v3024_v1  ;;  %1882 = vadd.xlane.f32.xlu1 %v1881_v25 }
 0x4a6   :  { %v1804_v33 = vmul.f32 %v3028_v54, %v1719_v27  ;;  %v1721_v34 = vmax.f32 %v1613_v28, 0.0 }
 0x4a7   :  { %v1805_v35 = vmul.f32 %v3032_v57, %v1720_v31  ;;  %v1722_v36 = vmax.f32 %v1615_v32, 0.0 }
 0x4a8   :  { %v1806_v37 = vmul.f32 %v3028_v54, %v1721_v34 }
 0x4a9   :  { %v1807_v38 = vmul.f32 %v3032_v57, %v1722_v36  ;;  %v1618_v15 = vpop.f32.mrb[100].mxu0  ;;  %v1884_v16 = vadd.f32 %v1805_v35, %v1804_v33 }
 0x4aa   :  { %v1619_v44 = vadd.f32 %v1618_v15, %v3019_v42  ;;  %v1620_v47 = vpop.f32.mrb[101].mxu0 }
 0x4ab   :  { %v1621_v13 = vadd.f32 %v1620_v47, %v3024_v1  ;;  %v1622_v48 = vpop.f32.mrb[102].mxu0  ;;  %1885 = vadd.xlane.f32.xlu0 %v1884_v16  ;;  %v1887_v51 = vadd.f32 %v1807_v38, %v1806_v37 }
 0x4ac   :  { %v1723_v20 = vmax.f32 %v1619_v44, 0.0  ;;  %v1623_v23 = vadd.f32 %v1622_v48, %v3019_v42  ;;  %v1624_v52 = vpop.f32.mrb[103].mxu0 }
 0x4ad   :  { %v1724_v55 = vmax.f32 %v1621_v13, 0.0  ;;  %v1625_v19 = vadd.f32 %v1624_v52, %v3024_v1  ;;  %1888 = vadd.xlane.f32.xlu1 %v1887_v51 }
 0x4ae   :  { %v1808_v29 = vmul.f32 %v3028_v54, %v1723_v20  ;;  %v1725_v39 = vmax.f32 %v1623_v23, 0.0 }
 0x4af   :  { %v1809_v40 = vmul.f32 %v3032_v57, %v1724_v55  ;;  %v1726_v41 = vmax.f32 %v1625_v19, 0.0 }
 0x4b0   :  { %v1810_v46 = vmul.f32 %v3028_v54, %v1725_v39 }
 0x4b1   :  { %v1811_v43 = vmul.f32 %v3032_v57, %v1726_v41  ;;  %v1628_v45 = vpop.f32.mrb[104].mxu0  ;;  %v1890_v49 = vadd.f32 %v1809_v40, %v1808_v29 }
 0x4b2   :  { %v1629_v50 = vadd.f32 %v1628_v45, %v3019_v42  ;;  %v1630_v53 = vpop.f32.mrb[105].mxu0 }
 0x4b3   :  { %v1631_v26 = vadd.f32 %v1630_v53, %v3024_v1  ;;  %v1632_v56 = vpop.f32.mrb[106].mxu0  ;;  %1891 = vadd.xlane.f32.xlu0 %v1890_v49  ;;  %v1893_v58 = vadd.f32 %v1811_v43, %v1810_v46 }
 0x4b4   :  { %v1727_v59 = vmax.f32 %v1629_v50, 0.0  ;;  %v1633_v11 = vadd.f32 %v1632_v56, %v3019_v42  ;;  %v1634_v14 = vpop.f32.mrb[107].mxu0 }
 0x4b5   :  { %v1728_v60 = vmax.f32 %v1631_v26, 0.0  ;;  %v1635_v61 = vadd.f32 %v1634_v14, %v3024_v1  ;;  %1894 = vadd.xlane.f32.xlu1 %v1893_v58 }
 0x4b6   :  { %v1812_v62 = vmul.f32 %v3028_v54, %v1727_v59  ;;  %v1729_v63 = vmax.f32 %v1633_v11, 0.0 }
 0x4b7   :  { %v1813_v0 = vmul.f32 %v3032_v57, %v1728_v60  ;;  %v1730_v2 = vmax.f32 %v1635_v61, 0.0 }
 0x4b8   :  { %v1814_v12 = vmul.f32 %v3028_v54, %v1729_v63 }
 0x4b9   :  { %v1815_v3 = vmul.f32 %v3032_v57, %v1730_v2  ;;  %v1638_v4 = vpop.f32.mrb[108].mxu0  ;;  %v1896_v5 = vadd.f32 %v1813_v0, %v1812_v62 }
 0x4ba   :  { %v1639_v6 = vadd.f32 %v1638_v4, %v3019_v42  ;;  %v1640_v7 = vpop.f32.mrb[109].mxu0 }
 0x4bb   :  { %v1641_v8 = vadd.f32 %v1640_v7, %v3024_v1  ;;  %v1642_v9 = vpop.f32.mrb[110].mxu0  ;;  %1897 = vadd.xlane.f32.xlu0 %v1896_v5  ;;  %v1899_v10 = vadd.f32 %v1815_v3, %v1814_v12 }
 0x4bc   :  { %v1731_v17 = vmax.f32 %v1639_v6, 0.0  ;;  %v1643_v18 = vadd.f32 %v1642_v9, %v3019_v42  ;;  %v1644_v21 = vpop.f32.mrb[111].mxu0 }
 0x4bd   :  { %v1732_v22 = vmax.f32 %v1641_v8, 0.0  ;;  %v1645_v24 = vadd.f32 %v1644_v21, %v3024_v1  ;;  %1900 = vadd.xlane.f32.xlu1 %v1899_v10 }
 0x4be   :  { %v1816_v25 = vmul.f32 %v3028_v54, %v1731_v17  ;;  %v1733_v27 = vmax.f32 %v1643_v18, 0.0 }
 0x4bf   :  { %v1817_v28 = vmul.f32 %v3032_v57, %v1732_v22  ;;  %v1734_v30 = vmax.f32 %v1645_v24, 0.0 }
 0x4c0   :  { %v1818_v31 = vmul.f32 %v3028_v54, %v1733_v27 }
 0x4c1   :  { %v1819_v32 = vmul.f32 %v3032_v57, %v1734_v30  ;;  %v1648_v33 = vpop.f32.mrb[112].mxu0  ;;  %v1902_v34 = vadd.f32 %v1817_v28, %v1816_v25 }
 0x4c2   :  { %v1649_v35 = vadd.f32 %v1648_v33, %v3019_v42  ;;  %v1650_v36 = vpop.f32.mrb[113].mxu0 }
 0x4c3   :  { %v1651_v37 = vadd.f32 %v1650_v36, %v3024_v1  ;;  %v1652_v38 = vpop.f32.mrb[114].mxu0  ;;  %1903 = vadd.xlane.f32.xlu0 %v1902_v34  ;;  %v1905_v15 = vadd.f32 %v1819_v32, %v1818_v31 }
 0x4c4   :  { %v1735_v16 = vmax.f32 %v1649_v35, 0.0  ;;  %v1653_v44 = vadd.f32 %v1652_v38, %v3019_v42  ;;  %v1654_v47 = vpop.f32.mrb[115].mxu0 }
 0x4c5   :  { %v1736_v13 = vmax.f32 %v1651_v37, 0.0  ;;  %v1655_v48 = vadd.f32 %v1654_v47, %v3024_v1  ;;  %1906 = vadd.xlane.f32.xlu1 %v1905_v15 }
 0x4c6   :  { %v1820_v51 = vmul.f32 %v3028_v54, %v1735_v16  ;;  %v1737_v20 = vmax.f32 %v1653_v44, 0.0 }
 0x4c7   :  { %v1821_v23 = vmul.f32 %v3032_v57, %v1736_v13  ;;  %v1738_v52 = vmax.f32 %v1655_v48, 0.0 }
 0x4c8   :  { %v1822_v55 = vmul.f32 %v3028_v54, %v1737_v20 }
 0x4c9   :  { %v1823_v19 = vmul.f32 %v3032_v57, %v1738_v52  ;;  %v1658_v29 = vpop.f32.mrb[116].mxu0  ;;  %v1908_v39 = vadd.f32 %v1821_v23, %v1820_v51 }
 0x4ca   :  { %v1659_v40 = vadd.f32 %v1658_v29, %v3019_v42  ;;  %v1660_v41 = vpop.f32.mrb[117].mxu0 }
 0x4cb   :  { %v1661_v46 = vadd.f32 %v1660_v41, %v3024_v1  ;;  %v1662_v43 = vpop.f32.mrb[118].mxu0  ;;  %1909 = vadd.xlane.f32.xlu0 %v1908_v39  ;;  %v1911_v45 = vadd.f32 %v1823_v19, %v1822_v55 }
 0x4cc   :  { %v1739_v49 = vmax.f32 %v1659_v40, 0.0  ;;  %v1663_v50 = vadd.f32 %v1662_v43, %v3019_v42  ;;  %v1664_v53 = vpop.f32.mrb[119].mxu0 }
 0x4cd   :  { %v1740_v26 = vmax.f32 %v1661_v46, 0.0  ;;  %v1665_v56 = vadd.f32 %v1664_v53, %v3024_v1  ;;  %1912 = vadd.xlane.f32.xlu1 %v1911_v45 }
 0x4ce   :  { %v1824_v58 = vmul.f32 %v3028_v54, %v1739_v49  ;;  %v1741_v59 = vmax.f32 %v1663_v50, 0.0 }
 0x4cf   :  { %v1825_v11 = vmul.f32 %v3032_v57, %v1740_v26  ;;  %v1742_v14 = vmax.f32 %v1665_v56, 0.0 }
 0x4d0   :  { %v1826_v60 = vmul.f32 %v3028_v54, %v1741_v59 }
 0x4d1   :  { %v1827_v61 = vmul.f32 %v3032_v57, %v1742_v14  ;;  %v1668_v62 = vpop.f32.mrb[120].mxu0  ;;  %v1914_v63 = vadd.f32 %v1825_v11, %v1824_v58 }
 0x4d2   :  { %v1669_v0 = vadd.f32 %v1668_v62, %v3019_v42  ;;  %v1670_v2 = vpop.f32.mrb[121].mxu0 }
 0x4d3   :  { %v1671_v12 = vadd.f32 %v1670_v2, %v3024_v1  ;;  %v1672_v3 = vpop.f32.mrb[122].mxu0  ;;  %1915 = vadd.xlane.f32.xlu0 %v1914_v63  ;;  %v1917_v4 = vadd.f32 %v1827_v61, %v1826_v60 }
 0x4d4   :  { %v1743_v5 = vmax.f32 %v1669_v0, 0.0  ;;  %v1673_v6 = vadd.f32 %v1672_v3, %v3019_v42  ;;  %v1674_v7 = vpop.f32.mrb[123].mxu0 }
 0x4d5   :  { %v1744_v8 = vmax.f32 %v1671_v12, 0.0  ;;  %v1675_v9 = vadd.f32 %v1674_v7, %v3024_v1  ;;  %1918 = vadd.xlane.f32.xlu1 %v1917_v4 }
 0x4d6   :  { %v1828_v10 = vmul.f32 %v3028_v54, %v1743_v5  ;;  %v1745_v17 = vmax.f32 %v1673_v6, 0.0 }
 0x4d7   :  { %v1829_v18 = vmul.f32 %v3032_v57, %v1744_v8  ;;  %v1746_v21 = vmax.f32 %v1675_v9, 0.0 }
 0x4d8   :  { %v1830_v22 = vmul.f32 %v3028_v54, %v1745_v17 }
 0x4d9   :  { %v1831_v24 = vmul.f32 %v3032_v57, %v1746_v21  ;;  %v1678_v25 = vpop.f32.mrb[124].mxu0  ;;  %v1920_v27 = vadd.f32 %v1829_v18, %v1828_v10 }
 0x4da   :  { %v1679_v28 = vadd.f32 %v1678_v25, %v3019_v42  ;;  %v1680_v30 = vpop.f32.mrb[125].mxu0 }
 0x4db   :  { %v1681_v31 = vadd.f32 %v1680_v30, %v3024_v1  ;;  %v1682_v32 = vpop.f32.mrb[126].mxu0  ;;  %1921 = vadd.xlane.f32.xlu0 %v1920_v27  ;;  %v1923_v33 = vadd.f32 %v1831_v24, %v1830_v22 }
 0x4dc   :  { %v1747_v34 = vmax.f32 %v1679_v28, 0.0  ;;  %v1683_v35 = vadd.f32 %v1682_v32, %v3019_v42  ;;  %v1684_v36 = vpop.f32.mrb[127].mxu0  ;;  %v3163_v42 = vld [vmem:[#allocation2] ss:$0 sm:$0xff] }
 0x4dd   :  { %v1748_v37 = vmax.f32 %v1681_v31, 0.0  ;;  %v1685_v38 = vadd.f32 %v1684_v36, %v3024_v1  ;;  %1924 = vadd.xlane.f32.xlu1 %v1923_v33 }
 0x4de   :  { %v1832_v15 = vmul.f32 %v3028_v54, %v1747_v34  ;;  %v1749_v16 = vmax.f32 %v1683_v35, 0.0 }
 0x4df   :  { %v1833_v44 = vmul.f32 %v3032_v57, %v1748_v37  ;;  %v1750_v47 = vmax.f32 %v1685_v38, 0.0 }
 0x4e0   :  { %v1834_v13 = vmul.f32 %v3028_v54, %v1749_v16 }
 0x4e1   :  { %v1835_v48 = vmul.f32 %v3032_v57, %v1750_v47  ;;  %v1926_v51 = vadd.f32 %v1833_v44, %v1832_v15 }
 0x4e3   :  { %1927 = vadd.xlane.f32.xlu0 %v1926_v51  ;;  %v1929_v20 = vadd.f32 %v1835_v48, %v1834_v13 }
 0x4e5   :  { %1930 = vadd.xlane.f32.xlu1 %v1929_v20 }
 0x4f8   :  { %v1838_v23 = vpop.xlane.xlu0 %1837 }
 0x4f9   :  { %v1939_v1 = vadd.f32 %v3163_v42, %v1838_v23 }
 0x4fb   :  { %1972 = vst.msk [vmem:[%s3338_s13] sm:$0xff] %vm1971_vm2, %v1939_v1 }
 0x4fc   :  { %v1841_v52 = vpop.xlane.xlu0 %1840 }
 0x4fd   :  { %v1940_v54 = vadd.f32 %v3163_v42, %v1841_v52 }
 0x4ff   :  { %1973 = vst.msk [vmem:[%s3338_s13 + $0x8] sm:$0xff] %vm1971_vm2, %v1940_v54 }
 0x500   :  { %v1844_v57 = vpop.xlane.xlu1 %1843 }
 0x501   :  { %v1941_v55 = vadd.f32 %v3163_v42, %v1844_v57 }
 0x503   :  { %1974 = vst.msk [vmem:[%s3338_s13 + $0x10] sm:$0xff] %vm1971_vm2, %v1941_v55 }
 0x504   :  { %v1847_v19 = vpop.xlane.xlu1 %1846 }
 0x505   :  { %v1942_v29 = vadd.f32 %v3163_v42, %v1847_v19 }
 0x507   :  { %1975 = vst.msk [vmem:[%s3338_s13 + $0x18] sm:$0xff] %vm1971_vm2, %v1942_v29 }
 0x508   :  { %v1850_v39 = vpop.xlane.xlu0 %1849 }
 0x509   :  { %v1943_v40 = vadd.f32 %v3163_v42, %v1850_v39 }
 0x50a   :  { %v1853_v41 = vpop.xlane.xlu1 %1852 }
 0x50b   :  { %1976 = vst.msk [vmem:[%s3338_s13 + $0x20] sm:$0xff] %vm1971_vm2, %v1943_v40  ;;  %v1944_v46 = vadd.f32 %v3163_v42, %v1853_v41 }
 0x50d   :  { %1977 = vst.msk [vmem:[%s3338_s13 + $0x28] sm:$0xff] %vm1971_vm2, %v1944_v46 }
 0x510   :  { %v1856_v43 = vpop.xlane.xlu0 %1855 }
 0x511   :  { %v1945_v45 = vadd.f32 %v3163_v42, %v1856_v43 }
 0x512   :  { %v1859_v49 = vpop.xlane.xlu1 %1858 }
 0x513   :  { %1978 = vst.msk [vmem:[%s3338_s13 + $0x30] sm:$0xff] %vm1971_vm2, %v1945_v45  ;;  %v1946_v50 = vadd.f32 %v3163_v42, %v1859_v49 }
 0x515   :  { %1979 = vst.msk [vmem:[%s3338_s13 + $0x38] sm:$0xff] %vm1971_vm2, %v1946_v50 }
 0x518   :  { %v1862_v53 = vpop.xlane.xlu0 %1861 }
 0x519   :  { %v1947_v26 = vadd.f32 %v3163_v42, %v1862_v53 }
 0x51a   :  { %v1865_v56 = vpop.xlane.xlu1 %1864 }
 0x51b   :  { %1980 = vst.msk [vmem:[%s3338_s13 + $0x40] sm:$0xff] %vm1971_vm2, %v1947_v26  ;;  %v1948_v58 = vadd.f32 %v3163_v42, %v1865_v56 }
 0x51d   :  { %1981 = vst.msk [vmem:[%s3338_s13 + $0x48] sm:$0xff] %vm1971_vm2, %v1948_v58 }
 0x520   :  { %v1868_v59 = vpop.xlane.xlu0 %1867 }
 0x521   :  { %v1949_v11 = vadd.f32 %v3163_v42, %v1868_v59 }
 0x522   :  { %v1871_v14 = vpop.xlane.xlu1 %1870 }
 0x523   :  { %1982 = vst.msk [vmem:[%s3338_s13 + $0x50] sm:$0xff] %vm1971_vm2, %v1949_v11  ;;  %v1950_v60 = vadd.f32 %v3163_v42, %v1871_v14 }
 0x525   :  { %1983 = vst.msk [vmem:[%s3338_s13 + $0x58] sm:$0xff] %vm1971_vm2, %v1950_v60 }
 0x528   :  { %v1874_v61 = vpop.xlane.xlu0 %1873 }
 0x529   :  { %v1951_v62 = vadd.f32 %v3163_v42, %v1874_v61 }
 0x52a   :  { %v1877_v63 = vpop.xlane.xlu1 %1876 }
 0x52b   :  { %1984 = vst.msk [vmem:[%s3338_s13 + $0x60] sm:$0xff] %vm1971_vm2, %v1951_v62  ;;  %v1952_v0 = vadd.f32 %v3163_v42, %v1877_v63 }
 0x52d   :  { %1985 = vst.msk [vmem:[%s3338_s13 + $0x68] sm:$0xff] %vm1971_vm2, %v1952_v0 }
 0x530   :  { %v1880_v2 = vpop.xlane.xlu0 %1879 }
 0x531   :  { %v1953_v12 = vadd.f32 %v3163_v42, %v1880_v2 }
 0x532   :  { %v1883_v3 = vpop.xlane.xlu1 %1882 }
 0x533   :  { %1986 = vst.msk [vmem:[%s3338_s13 + $0x70] sm:$0xff] %vm1971_vm2, %v1953_v12  ;;  %v1954_v4 = vadd.f32 %v3163_v42, %v1883_v3 }
 0x535   :  { %1987 = vst.msk [vmem:[%s3338_s13 + $0x78] sm:$0xff] %vm1971_vm2, %v1954_v4 }
 0x538   :  { %v1886_v5 = vpop.xlane.xlu0 %1885 }
 0x539   :  { %v1955_v6 = vadd.f32 %v3163_v42, %v1886_v5 }
 0x53a   :  { %v1889_v7 = vpop.xlane.xlu1 %1888 }
 0x53b   :  { %1988 = vst.msk [vmem:[%s3338_s13 + $0x80] sm:$0xff] %vm1971_vm2, %v1955_v6  ;;  %v1956_v8 = vadd.f32 %v3163_v42, %v1889_v7 }
 0x53d   :  { %1989 = vst.msk [vmem:[%s3338_s13 + $0x88] sm:$0xff] %vm1971_vm2, %v1956_v8 }
 0x540   :  { %v1892_v9 = vpop.xlane.xlu0 %1891 }
 0x541   :  { %v1957_v10 = vadd.f32 %v3163_v42, %v1892_v9 }
 0x542   :  { %v1895_v17 = vpop.xlane.xlu1 %1894 }
 0x543   :  { %1990 = vst.msk [vmem:[%s3338_s13 + $0x90] sm:$0xff] %vm1971_vm2, %v1957_v10  ;;  %v1958_v18 = vadd.f32 %v3163_v42, %v1895_v17 }
 0x545   :  { %1991 = vst.msk [vmem:[%s3338_s13 + $0x98] sm:$0xff] %vm1971_vm2, %v1958_v18 }
 0x548   :  { %v1898_v21 = vpop.xlane.xlu0 %1897 }
 0x549   :  { %v1959_v22 = vadd.f32 %v3163_v42, %v1898_v21 }
 0x54a   :  { %v1901_v24 = vpop.xlane.xlu1 %1900 }
 0x54b   :  { %1992 = vst.msk [vmem:[%s3338_s13 + $0xa0] sm:$0xff] %vm1971_vm2, %v1959_v22  ;;  %v1960_v25 = vadd.f32 %v3163_v42, %v1901_v24 }
 0x54d   :  { %1993 = vst.msk [vmem:[%s3338_s13 + $0xa8] sm:$0xff] %vm1971_vm2, %v1960_v25 }
 0x550   :  { %v1904_v27 = vpop.xlane.xlu0 %1903 }
 0x551   :  { %v1961_v28 = vadd.f32 %v3163_v42, %v1904_v27 }
 0x552   :  { %v1907_v30 = vpop.xlane.xlu1 %1906 }
 0x553   :  { %1994 = vst.msk [vmem:[%s3338_s13 + $0xb0] sm:$0xff] %vm1971_vm2, %v1961_v28  ;;  %v1962_v31 = vadd.f32 %v3163_v42, %v1907_v30 }
 0x555   :  { %1995 = vst.msk [vmem:[%s3338_s13 + $0xb8] sm:$0xff] %vm1971_vm2, %v1962_v31 }
 0x558   :  { %v1910_v32 = vpop.xlane.xlu0 %1909 }
 0x559   :  { %v1963_v33 = vadd.f32 %v3163_v42, %v1910_v32 }
 0x55a   :  { %v1913_v34 = vpop.xlane.xlu1 %1912 }
 0x55b   :  { %1996 = vst.msk [vmem:[%s3338_s13 + $0xc0] sm:$0xff] %vm1971_vm2, %v1963_v33  ;;  %v1964_v35 = vadd.f32 %v3163_v42, %v1913_v34 }
 0x55d   :  { %1997 = vst.msk [vmem:[%s3338_s13 + $0xc8] sm:$0xff] %vm1971_vm2, %v1964_v35 }
 0x560   :  { %v1916_v36 = vpop.xlane.xlu0 %1915 }
 0x561   :  { %v1965_v37 = vadd.f32 %v3163_v42, %v1916_v36 }
 0x562   :  { %v1919_v38 = vpop.xlane.xlu1 %1918 }
 0x563   :  { %1998 = vst.msk [vmem:[%s3338_s13 + $0xd0] sm:$0xff] %vm1971_vm2, %v1965_v37  ;;  %v1966_v15 = vadd.f32 %v3163_v42, %v1919_v38 }
 0x565   :  { %1999 = vst.msk [vmem:[%s3338_s13 + $0xd8] sm:$0xff] %vm1971_vm2, %v1966_v15 }
 0x568   :  { %v1922_v16 = vpop.xlane.xlu0 %1921 }
 0x569   :  { %v1967_v44 = vadd.f32 %v3163_v42, %v1922_v16 }
 0x56a   :  { %v1925_v47 = vpop.xlane.xlu1 %1924 }
 0x56b   :  { %2000 = vst.msk [vmem:[%s3338_s13 + $0xe0] sm:$0xff] %vm1971_vm2, %v1967_v44  ;;  %v1968_v13 = vadd.f32 %v3163_v42, %v1925_v47 }
 0x56d   :  { %2001 = vst.msk [vmem:[%s3338_s13 + $0xe8] sm:$0xff] %vm1971_vm2, %v1968_v13 }
 0x570   :  { %v1928_v48 = vpop.xlane.xlu0 %1927 }
 0x571   :  { %v1969_v51 = vadd.f32 %v3163_v42, %v1928_v48 }
 0x572   :  { %v1931_v20 = vpop.xlane.xlu1 %1930 }
 0x573   :  { %2002 = vst.msk [vmem:[%s3338_s13 + $0xf0] sm:$0xff] %vm1971_vm2, %v1969_v51  ;;  %v1970_v23 = vadd.f32 %v3163_v42, %v1931_v20 }
 0x575   :  { %2003 = vst.msk [vmem:[%s3338_s13 + $0xf8] sm:$0xff] %vm1971_vm2, %v1970_v23 }

</bundles_post_ra>
